<compile_context>
chip_gen: v7x
topology: tpu7x:2x2x1
jax: 0.10.0
libtpu: 0.0.40
codegen_flags: <defaults>
</compile_context>

<pallas_src>
import re

import jax
import jax.numpy as jnp
from jax.experimental import pallas as pl
from jax.experimental.pallas import tpu as pltpu

HIDDEN_DIM = 256      # C
NUM_PROPOSALS = 64    # N
KERNEL_SIZE = 3       # K
NK_PAD = 128          # padded output width of the dynamic-weight Linear
LN_EPS = 1e-5


def _cdiv(a, b):
    return -(-a // b)


def _tpu_generation(default=6):
    """Best-effort TPU generation (5 / 6 / 7) from the device kind string."""
    try:
        kind = jax.devices()[0].device_kind.lower()
    except Exception:
        return default
    m = re.search(r"(\d+)", kind)
    return int(m.group(1)) if m else default


def dysepconv_kernel(q_ref, v_ref, wt_ref, b_ref, gamma_ref, beta_ref,
                     edge_ref, lnm_ref, o_ref):
    # q_ref, v_ref : (Bb, N, C) (f32 or bf16)     o_ref : (Bb, N, C) f32
    # wt_ref : (C, 128) columns [0:N) = pointwise weights, [N:N+3) depth taps
    # b_ref  : (1, 128)   gamma_ref / beta_ref : (1, C)
    # edge_ref : (2, C)   row 0 zeroes lane 0, row 1 zeroes lane C-1
    # lnm_ref  : (C, C)   constant 1/C matrix for LN statistics on the MXU
    Bb, N, C = q_ref.shape

    q2 = q_ref[...].astype(jnp.float32).reshape(Bb * N, C)
    v2 = v_ref[...].astype(jnp.float32).reshape(Bb * N, C)

    # Dynamic conv weights: Linear(C -> N+K), reordered/padded to 128 lanes.
    dw = jnp.dot(q2, wt_ref[...],
                 preferred_element_type=jnp.float32) + b_ref[...]   # (Bb*N,128)

    # Depthwise conv1d along C, groups=N, padding='same' (pad=1), PyTorch
    # cross-correlation: out[c] = v[c-1]*w0 + v[c]*w1 + v[c+1]*w2.
    # Shifts via XLU roll; wrapped boundary lanes killed with a (2,C) mask
    # (one VPU multiply per tap, no full-tile iota / compare / select).
    edge = edge_ref[...]
    v_m1 = pltpu.roll(v2, 1, 1) * edge[0:1, :]       # v[c-1], lane 0 zeroed
    v_p1 = pltpu.roll(v2, C - 1, 1) * edge[1:2, :]   # v[c+1], lane C-1 zeroed
    depth = (v_m1 * dw[:, N:N + 1]
             + v2 * dw[:, N + 1:N + 2]
             + v_p1 * dw[:, N + 2:N + 3])
    act = jnp.maximum(depth, 0.0).reshape(Bb, N, C)                  # ReLU

    # Pointwise conv1d (kernel size 1): out[b,m,c] = sum_n pw[b,m,n]*act[b,n,c]
    point_w = dw[:, :N].reshape(Bb, N, N)
    point = jnp.einsum('bmn,bnc->bmc', point_w, act,
                       preferred_element_type=jnp.float32)           # (Bb,N,C)
    point = point.reshape(Bb * N, C)

    # LayerNorm over C with statistics on the MXU (two-pass, biased variance):
    # matmul against the constant (C,C) 1/C matrix yields mean / var already
    # broadcast across all 256 lanes -> no cross-lane XLU reductions.
    lnm = lnm_ref[...]
    mean_b = jnp.dot(point, lnm, preferred_element_type=jnp.float32)
    centered = point - mean_b
    var_b = jnp.dot(centered * centered, lnm,
                    preferred_element_type=jnp.float32)
    inv_std = jax.lax.rsqrt(var_b + LN_EPS)
    out = centered * inv_std * gamma_ref[...] + beta_ref[...]
    o_ref[...] = out.reshape(Bb, N, C).astype(o_ref.dtype)


def dysep_conv_atten(query, value, w_lin, b_lin, ln_gamma, ln_beta):
    """query, value: (B, N, C) float32. w_lin: (N+K, C), b_lin: (N+K,),
    ln_gamma / ln_beta: (C,). Returns (B, N, C) float32."""
    B, N, C = query.shape
    value = value.reshape(B, N, C)

    gen = _tpu_generation()
    multi_core = gen >= 7                       # v7x megacore: 2 TCs/chip
    bb_cap = 32 if gen >= 6 else 8              # v5e: smaller scoped VMEM/BW
    io_dtype = jnp.bfloat16 if gen <= 5 else jnp.float32  # v5e is DMA-bound
    vmem_limit = (48 << 20) if gen >= 7 else (96 << 20) if gen >= 6 else (64 << 20)

    # Grid sizing: fold as many batches as possible into each step; on v7x
    # force an even number of "parallel" steps so both TensorCores get equal
    # work (odd step counts lose up to ~33% to core imbalance).
    steps = _cdiv(B, bb_cap)
    if multi_core and B >= 2:
        steps = max(steps + (steps % 2), 2)
    Bb = _cdiv(B, steps)
    B_pad = steps * Bb

    if B_pad != B:
        pad = B_pad - B
        query = jnp.pad(query, ((0, pad), (0, 0), (0, 0)))
        value = jnp.pad(value, ((0, pad), (0, 0), (0, 0)))
    query = query.astype(io_dtype)
    value = value.astype(io_dtype)

    # Reorder Linear outputs: [pointwise(64) | depthwise taps(3) | zero pad]
    # so point_w starts at lane 0 and dw is an unmasked 128-lane tile.
    w = jnp.asarray(w_lin, jnp.float32)                       # (N+K, C)
    b = jnp.asarray(b_lin, jnp.float32)                       # (N+K,)
    w_re = jnp.concatenate([w[KERNEL_SIZE:], w[:KERNEL_SIZE]], axis=0)
    b_re = jnp.concatenate([b[KERNEL_SIZE:], b[:KERNEL_SIZE]], axis=0)
    w_pad = jnp.zeros((NK_PAD, C), jnp.float32).at[:N + KERNEL_SIZE].set(w_re)
    b_pad = jnp.zeros((1, NK_PAD), jnp.float32).at[0, :N + KERNEL_SIZE].set(b_re)
    wt = w_pad.T                                              # (C, 128)
    g2 = jnp.asarray(ln_gamma, jnp.float32).reshape(1, C)
    be2 = jnp.asarray(ln_beta, jnp.float32).reshape(1, C)

    # Depthwise boundary mask (row 0: zero at lane 0, row 1: zero at lane C-1)
    # and the constant 1/C matrix for LN statistics on the MXU.
    edge = jnp.ones((2, C), jnp.float32).at[0, 0].set(0.0).at[1, C - 1].set(0.0)
    lnm = jnp.full((C, C), 1.0 / C, jnp.float32)

    in_itemsize = 2 if io_dtype == jnp.bfloat16 else 4
    flops = (2 * B_pad * N * C * NK_PAD          # dynamic weight matmul
             + 8 * B_pad * N * C                 # depthwise conv + relu
             + 2 * B_pad * N * N * C             # pointwise conv
             + 4 * B_pad * N * C * C             # LN mean / var matmuls
             + 8 * B_pad * N * C)                # LN normalize
    bytes_accessed = (2 * B_pad * N * C * in_itemsize      # q, v in
                      + B_pad * N * C * 4                  # out
                      + (C * NK_PAD + NK_PAD + 4 * C + C * C) * 4)

    out = pl.pallas_call(
        dysepconv_kernel,
        out_shape=jax.ShapeDtypeStruct((B_pad, N, C), jnp.float32),
        grid=(steps,),
        in_specs=[
            pl.BlockSpec((Bb, N, C), lambda i: (i, 0, 0)),     # query
            pl.BlockSpec((Bb, N, C), lambda i: (i, 0, 0)),     # value
            pl.BlockSpec((C, NK_PAD), lambda i: (0, 0)),       # W^T (reordered)
            pl.BlockSpec((1, NK_PAD), lambda i: (0, 0)),       # bias
            pl.BlockSpec((1, C), lambda i: (0, 0)),            # LN gamma
            pl.BlockSpec((1, C), lambda i: (0, 0)),            # LN beta
            pl.BlockSpec((2, C), lambda i: (0, 0)),            # edge mask
            pl.BlockSpec((C, C), lambda i: (0, 0)),            # 1/C matrix
        ],
        out_specs=pl.BlockSpec((Bb, N, C), lambda i: (i, 0, 0)),
        compiler_params=pltpu.CompilerParams(
            dimension_semantics=("parallel",),
            vmem_limit_bytes=vmem_limit),
        cost_estimate=pl.CostEstimate(
            flops=flops,
            transcendentals=B_pad * N * C,
            bytes_accessed=bytes_accessed),
    )(query, value, wt, b_pad, g2, be2, edge, lnm)

    return out[:B] if B_pad != B else out


def reference(query, value, w_lin, b_lin, ln_gamma, ln_beta):
    # Pure-JAX reference mirroring the PyTorch forward.
    dw = query @ w_lin.T + b_lin
    depth_w = dw[..., :KERNEL_SIZE]
    point_w = dw[..., KERNEL_SIZE:]
    vpad = jnp.pad(value, ((0, 0), (0, 0), (1, 1)))
    depth = (vpad[..., :-2] * depth_w[..., 0:1]
             + vpad[..., 1:-1] * depth_w[..., 1:2]
             + vpad[..., 2:] * depth_w[..., 2:3])
    act = jnp.maximum(depth, 0.0)
    point = jnp.einsum('bmn,bnc->bmc', point_w, act)
    mean = point.mean(-1, keepdims=True)
    var = ((point - mean) ** 2).mean(-1, keepdims=True)
    return (point - mean) / jnp.sqrt(var + LN_EPS) * ln_gamma + ln_beta


if __name__ == "__main__":
    B, N, C = 2, NUM_PROPOSALS, HIDDEN_DIM
    key = jax.random.PRNGKey(0)
    k_q, k_v, k_w = jax.random.split(key, 3)

    query = jax.random.normal(k_q, (B, N, C), dtype=jnp.float32)
    value = jax.random.normal(k_v, (B, N, C), dtype=jnp.float32)

    # Deterministic parameter init matching the module's __init__:
    #  - weight_linear.weight: trunc_normal(std=0.02), bias: 0
    #  - LayerNorm: weight=1, bias=0
    w_lin = (jax.random.truncated_normal(k_w, -2.0, 2.0,
                                         (N + KERNEL_SIZE, C),
                                         dtype=jnp.float32) * 0.02)
    b_lin = jnp.zeros((N + KERNEL_SIZE,), dtype=jnp.float32)
    ln_gamma = jnp.ones((C,), dtype=jnp.float32)
    ln_beta = jnp.zeros((C,), dtype=jnp.float32)

    # On v5e the kernel streams query/value as bf16; quantize the inputs here
    # so the f32 reference sees exactly the same values and the tolerance
    # stays tight (kernel math stays f32 after the cast).
    if _tpu_generation() <= 5:
        query = query.astype(jnp.bfloat16).astype(jnp.float32)
        value = value.astype(jnp.bfloat16).astype(jnp.float32)

    out = dysep_conv_atten(query, value, w_lin, b_lin, ln_gamma, ln_beta)
    out = jax.block_until_ready(out)

    ref = jax.block_until_ready(
        reference(query, value, w_lin, b_lin, ln_gamma, ln_beta))
    assert out.shape == (B, N, C)
    assert jnp.allclose(out, ref, atol=1e-4, rtol=1e-4), "mismatch vs reference"

    print("KERNEL_OK")
</pallas_src>

<mosaic_0001>
module attributes {stable_mosaic.version = 11 : i64} {
  func.func @dysepconv_kernel(%arg0: i32, %arg1: memref<2x64x256xf32, #tpu.memory_space<vmem>>, %arg2: memref<2x64x256xf32, #tpu.memory_space<vmem>>, %arg3: memref<256x128xf32, #tpu.memory_space<vmem>>, %arg4: memref<1x128xf32, #tpu.memory_space<vmem>>, %arg5: memref<1x256xf32, #tpu.memory_space<vmem>>, %arg6: memref<1x256xf32, #tpu.memory_space<vmem>>, %arg7: memref<2x256xf32, #tpu.memory_space<vmem>>, %arg8: memref<256x256xf32, #tpu.memory_space<vmem>>, %arg9: memref<2x64x256xf32, #tpu.memory_space<vmem>>) attributes {dimension_semantics = [#tpu.dimension_semantics<parallel>], iteration_bounds = array<i64: 1>, scalar_prefetch = 0 : i64, scratch_operands = 0 : i64, tpu.core_type = #tpu.core_type<tc>, window_params = [{transform_indices = @transform_0, window_bounds = array<i64: 2, 64, 256>}, {transform_indices = @transform_1, window_bounds = array<i64: 2, 64, 256>}, {pipeline_mode = #tpu.pipeline_mode<synchronous>, transform_indices = @transform_2, window_bounds = array<i64: 256, 128>}, {pipeline_mode = #tpu.pipeline_mode<synchronous>, transform_indices = @transform_3, window_bounds = array<i64: 1, 128>}, {pipeline_mode = #tpu.pipeline_mode<synchronous>, transform_indices = @transform_4, window_bounds = array<i64: 1, 256>}, {pipeline_mode = #tpu.pipeline_mode<synchronous>, transform_indices = @transform_5, window_bounds = array<i64: 1, 256>}, {pipeline_mode = #tpu.pipeline_mode<synchronous>, transform_indices = @transform_6, window_bounds = array<i64: 2, 256>}, {pipeline_mode = #tpu.pipeline_mode<synchronous>, transform_indices = @transform_7, window_bounds = array<i64: 256, 256>}, {transform_indices = @transform_8, window_bounds = array<i64: 2, 64, 256>}]} {
    %c0 = arith.constant 0 : index
    %c0_0 = arith.constant 0 : index
    %c0_1 = arith.constant 0 : index
    %0 = vector.load %arg1[%c0, %c0_0, %c0_1] : memref<2x64x256xf32, #tpu.memory_space<vmem>>, vector<2x64x256xf32>
    %1 = vector.shape_cast %0 : vector<2x64x256xf32> to vector<128x256xf32>
    %c0_2 = arith.constant 0 : index
    %c0_3 = arith.constant 0 : index
    %c0_4 = arith.constant 0 : index
    %2 = vector.load %arg2[%c0_2, %c0_3, %c0_4] : memref<2x64x256xf32, #tpu.memory_space<vmem>>, vector<2x64x256xf32>
    %3 = vector.shape_cast %2 : vector<2x64x256xf32> to vector<128x256xf32>
    %c0_5 = arith.constant 0 : index
    %c0_6 = arith.constant 0 : index
    %4 = vector.load %arg3[%c0_5, %c0_6] : memref<256x128xf32, #tpu.memory_space<vmem>>, vector<256x128xf32>
    %cst = arith.constant dense<0.000000e+00> : vector<128x128xf32>
    %5 = tpu.matmul %1, %4, %cst {dimension_numbers = #tpu.dot_dimension_numbers<[1], [0], [0], [1], [0, 0, 1, 1], [], []>} : vector<128x256xf32>, vector<256x128xf32>, vector<128x128xf32> -> vector<128x128xf32>
    %c0_7 = arith.constant 0 : index
    %c0_8 = arith.constant 0 : index
    %6 = vector.load %arg4[%c0_7, %c0_8] : memref<1x128xf32, #tpu.memory_space<vmem>>, vector<1x128xf32>
    %7 = vector.broadcast %6 : vector<1x128xf32> to vector<128x128xf32>
    %8 = arith.addf %5, %7 : vector<128x128xf32>
    %c0_9 = arith.constant 0 : index
    %c0_10 = arith.constant 0 : index
    %9 = vector.load %arg7[%c0_9, %c0_10] : memref<2x256xf32, #tpu.memory_space<vmem>>, vector<2x256xf32>
    %c1_i32 = arith.constant 1 : i32
    %10 = tpu.dynamic_rotate %3 by %c1_i32 dim 1 : vector<128x256xf32>, i32 -> vector<128x256xf32>
    %11 = vector.extract_strided_slice %9 {offsets = [0, 0], sizes = [1, 256], strides = [1, 1]} : vector<2x256xf32> to vector<1x256xf32>
    %12 = vector.broadcast %11 : vector<1x256xf32> to vector<128x256xf32>
    %13 = arith.mulf %10, %12 : vector<128x256xf32>
    %c255_i32 = arith.constant 255 : i32
    %14 = tpu.dynamic_rotate %3 by %c255_i32 dim 1 : vector<128x256xf32>, i32 -> vector<128x256xf32>
    %15 = vector.extract_strided_slice %9 {offsets = [1, 0], sizes = [1, 256], strides = [1, 1]} : vector<2x256xf32> to vector<1x256xf32>
    %16 = vector.broadcast %15 : vector<1x256xf32> to vector<128x256xf32>
    %17 = arith.mulf %14, %16 : vector<128x256xf32>
    %18 = vector.extract_strided_slice %8 {offsets = [0, 64], sizes = [128, 1], strides = [1, 1]} : vector<128x128xf32> to vector<128x1xf32>
    %19 = vector.broadcast %18 : vector<128x1xf32> to vector<128x256xf32>
    %20 = arith.mulf %13, %19 : vector<128x256xf32>
    %21 = vector.extract_strided_slice %8 {offsets = [0, 65], sizes = [128, 1], strides = [1, 1]} : vector<128x128xf32> to vector<128x1xf32>
    %22 = vector.broadcast %21 : vector<128x1xf32> to vector<128x256xf32>
    %23 = arith.mulf %3, %22 : vector<128x256xf32>
    %24 = arith.addf %20, %23 : vector<128x256xf32>
    %25 = vector.extract_strided_slice %8 {offsets = [0, 66], sizes = [128, 1], strides = [1, 1]} : vector<128x128xf32> to vector<128x1xf32>
    %26 = vector.broadcast %25 : vector<128x1xf32> to vector<128x256xf32>
    %27 = arith.mulf %17, %26 : vector<128x256xf32>
    %28 = arith.addf %24, %27 : vector<128x256xf32>
    %cst_11 = arith.constant 0.000000e+00 : f32
    %29 = vector.broadcast %cst_11 : f32 to vector<128x256xf32>
    %30 = arith.maximumf %28, %29 : vector<128x256xf32>
    %31 = vector.shape_cast %30 : vector<128x256xf32> to vector<2x64x256xf32>
    %32 = vector.extract_strided_slice %8 {offsets = [0, 0], sizes = [128, 64], strides = [1, 1]} : vector<128x128xf32> to vector<128x64xf32>
    %33 = vector.shape_cast %32 : vector<128x64xf32> to vector<2x64x64xf32>
    "tpu.trace_start"() <{level = 10 : i32, message = "bmn,bnc->bmc"}> : () -> ()
    %cst_12 = arith.constant dense<0.000000e+00> : vector<2x64x256xf32>
    %34 = tpu.matmul %33, %31, %cst_12 {dimension_numbers = #tpu.dot_dimension_numbers<[2], [1], [1], [2], [0, 0, 0, 1, 1, 2], [0], [0]>} : vector<2x64x64xf32>, vector<2x64x256xf32>, vector<2x64x256xf32> -> vector<2x64x256xf32>
    "tpu.trace_stop"() : () -> ()
    %35 = vector.shape_cast %34 : vector<2x64x256xf32> to vector<128x256xf32>
    %c0_13 = arith.constant 0 : index
    %c0_14 = arith.constant 0 : index
    %36 = vector.load %arg8[%c0_13, %c0_14] : memref<256x256xf32, #tpu.memory_space<vmem>>, vector<256x256xf32>
    %cst_15 = arith.constant dense<0.000000e+00> : vector<128x256xf32>
    %37 = tpu.matmul %35, %36, %cst_15 {dimension_numbers = #tpu.dot_dimension_numbers<[1], [0], [0], [1], [0, 0, 1, 1], [], []>} : vector<128x256xf32>, vector<256x256xf32>, vector<128x256xf32> -> vector<128x256xf32>
    %38 = arith.subf %35, %37 : vector<128x256xf32>
    %39 = arith.mulf %38, %38 : vector<128x256xf32>
    %cst_16 = arith.constant dense<0.000000e+00> : vector<128x256xf32>
    %40 = tpu.matmul %39, %36, %cst_16 {dimension_numbers = #tpu.dot_dimension_numbers<[1], [0], [0], [1], [0, 0, 1, 1], [], []>} : vector<128x256xf32>, vector<256x256xf32>, vector<128x256xf32> -> vector<128x256xf32>
    %cst_17 = arith.constant 9.99999974E-6 : f32
    %41 = vector.broadcast %cst_17 : f32 to vector<128x256xf32>
    %42 = arith.addf %40, %41 : vector<128x256xf32>
    %43 = math.rsqrt %42 : vector<128x256xf32>
    %44 = arith.mulf %38, %43 : vector<128x256xf32>
    %c0_18 = arith.constant 0 : index
    %c0_19 = arith.constant 0 : index
    %45 = vector.load %arg5[%c0_18, %c0_19] : memref<1x256xf32, #tpu.memory_space<vmem>>, vector<1x256xf32>
    %46 = vector.broadcast %45 : vector<1x256xf32> to vector<128x256xf32>
    %47 = arith.mulf %44, %46 : vector<128x256xf32>
    %c0_20 = arith.constant 0 : index
    %c0_21 = arith.constant 0 : index
    %48 = vector.load %arg6[%c0_20, %c0_21] : memref<1x256xf32, #tpu.memory_space<vmem>>, vector<1x256xf32>
    %49 = vector.broadcast %48 : vector<1x256xf32> to vector<128x256xf32>
    %50 = arith.addf %47, %49 : vector<128x256xf32>
    %51 = vector.shape_cast %50 : vector<128x256xf32> to vector<2x64x256xf32>
    %c0_22 = arith.constant 0 : index
    %c0_23 = arith.constant 0 : index
    %c0_24 = arith.constant 0 : index
    %52 = vector.load %arg9[%c0_22, %c0_23, %c0_24] : memref<2x64x256xf32, #tpu.memory_space<vmem>>, vector<2x64x256xf32>
    tpu.vector_store %arg9[%c0_22, %c0_23, %c0_24], %51 {strides = array<i32>} : memref<2x64x256xf32, #tpu.memory_space<vmem>>, vector<2x64x256xf32>,
    return
  }
  func.func @transform_0(%arg0: i32) -> (i32, i32, i32) {
    %c0_i32 = arith.constant 0 : i32
    %c0_i32_0 = arith.constant 0 : i32
    %c0_i32_1 = arith.constant 0 : i32
    return %arg0, %c0_i32, %c0_i32_0 : i32, i32, i32
  }
  func.func @transform_1(%arg0: i32) -> (i32, i32, i32) {
    %c0_i32 = arith.constant 0 : i32
    %c0_i32_0 = arith.constant 0 : i32
    %c0_i32_1 = arith.constant 0 : i32
    return %arg0, %c0_i32, %c0_i32_0 : i32, i32, i32
  }
  func.func @transform_2(%arg0: i32) -> (i32, i32) {
    %c0_i32 = arith.constant 0 : i32
    %c0_i32_0 = arith.constant 0 : i32
    %c0_i32_1 = arith.constant 0 : i32
    return %c0_i32, %c0_i32_0 : i32, i32
  }
  func.func @transform_3(%arg0: i32) -> (i32, i32) {
    %c0_i32 = arith.constant 0 : i32
    %c0_i32_0 = arith.constant 0 : i32
    %c0_i32_1 = arith.constant 0 : i32
    return %c0_i32, %c0_i32_0 : i32, i32
  }
  func.func @transform_4(%arg0: i32) -> (i32, i32) {
    %c0_i32 = arith.constant 0 : i32
    %c0_i32_0 = arith.constant 0 : i32
    %c0_i32_1 = arith.constant 0 : i32
    return %c0_i32, %c0_i32_0 : i32, i32
  }
  func.func @transform_5(%arg0: i32) -> (i32, i32) {
    %c0_i32 = arith.constant 0 : i32
    %c0_i32_0 = arith.constant 0 : i32
    %c0_i32_1 = arith.constant 0 : i32
    return %c0_i32, %c0_i32_0 : i32, i32
  }
  func.func @transform_6(%arg0: i32) -> (i32, i32) {
    %c0_i32 = arith.constant 0 : i32
    %c0_i32_0 = arith.constant 0 : i32
    %c0_i32_1 = arith.constant 0 : i32
    return %c0_i32, %c0_i32_0 : i32, i32
  }
  func.func @transform_7(%arg0: i32) -> (i32, i32) {
    %c0_i32 = arith.constant 0 : i32
    %c0_i32_0 = arith.constant 0 : i32
    %c0_i32_1 = arith.constant 0 : i32
    return %c0_i32, %c0_i32_0 : i32, i32
  }
  func.func @transform_8(%arg0: i32) -> (i32, i32, i32) {
    %c0_i32 = arith.constant 0 : i32
    %c0_i32_0 = arith.constant 0 : i32
    %c0_i32_1 = arith.constant 0 : i32
    return %arg0, %c0_i32, %c0_i32_0 : i32, i32, i32
  }
}

</mosaic_0001>

<bundles_post_ra>
// kernel: tpu_custom_call.1
= control target key start
LH: loop header
LB: loop body
LE: loop exit
PB: predicated region body
PF: predicated region fallthrough
CT: control target
= control target key end

     0   :  { %13 = vsyncpa [#allocation3], 0  ;;  %s4126_s0 = inlined_call_operand.hbm [shape: f32[2,64,256], index: 0, kind: input, shape index: {}]   ;;  %s4127_s1 = inlined_call_operand.hbm [shape: f32[2,64,256], index: 1, kind: input, shape index: {}]   ;;  %s4128_s2 = inlined_call_operand.hbm [shape: f32[256,128], index: 2, kind: input, shape index: {}]   ;;  %s4129_s3 = inlined_call_operand.hbm [shape: f32[1,128], index: 3, kind: input, shape index: {}]   ;;  %s4130_s4 = inlined_call_operand.hbm [shape: f32[1,256], index: 4, kind: input, shape index: {}]   ;;  %s4131_s5 = inlined_call_operand.hbm [shape: f32[1,256], index: 5, kind: input, shape index: {}]   ;;  %s4132_s6 = inlined_call_operand.hbm [shape: f32[2,256], index: 6, kind: input, shape index: {}]   ;;  %s4133_s7 = inlined_call_operand.hbm [shape: f32[256,256], index: 7, kind: input, shape index: {}]   ;;  %s4134_s8 = inlined_call_operand.hbm [shape: f32[2,64,256], index: 8, kind: output, shape index: {}]  }
   0x1   :  { %14 = vsyncpa [#allocation6], 0 }
   0x2   :  { %15 = vsyncpa [#allocation9], 0 }
   0x3   :  { %16 = vsyncpa [#allocation12], 0 }
   0x4   :  { %17 = vsyncpa [#allocation15], 0 }
   0x5   :  { %18 = vsyncpa [#allocation4], 0  ;;  %s2666_s27 = smov [#allocation5]   ;;  %s2667_s29 = smov [#allocation8]  }
   0x6   :  { %s36_s28 = sshll.u32 %s2666_s27, 4  ;;  %s61_s30 = sshll.u32 %s2667_s29, 4  ;;  %s37_s28 = int_to_ptr.vmem [resolvable:$true] %s36_s28  ;;  %s2730_s30 = int_to_ptr.vmem [resolvable:$true] %s61_s30 }
   0x7   :  { %s2456_s11 = scalar_lea.hbm %s4127_s1, 4096 }
   0x8   :  { %p2457_p0 = scmp.ne.s32.totalorder %s4127_s1, %s2456_s11  ;;  %p2460_p1 = scmp.lt.u32.totalorder %s2456_s11, %s4127_s1 }
   0xa   :  { %p2462_p2 = pnand %p2460_p1, %p2457_p0 }
   0xc   :  { %2465 = shalt.err (!%p2462_p2)
}
   0xd   :  { %s2466_s16 = scalar_lea.vmem %s37_s28, 4096  ;;  %p2471_p4 = scmp.lt.s32.totalorder %s37_s28, %s37_s28 }
   0xe   :  { %p2467_p3 = scmp.ne.s32.totalorder %s37_s28, %s2466_s16  ;;  %p2472_p5 = scmp.lt.s32.totalorder %s2466_s16, %s2466_s16 }
  0x10   :  { %p2473_p6 = por %p2472_p5, %p2471_p4 }
  0x12   :  { %p2474_p7 = pnand %p2473_p6, %p2467_p3 }
  0x14   :  { %2477 = shalt.err (!%p2474_p7)
}
  0x15   :  { %s2668_s17 = smov 256   ;;  %s2669_s18 = smov 16  }
  0x16   :  { %42 = dma.hbm_to_vmem [thread:$0]  %s4127_s1, 4096, %s37_s28, [#allocation6], %s2668_s17, %s2668_s17, %s2669_s18  }
  0x17   :  { %s2478_s23 = scalar_lea.hbm %s4129_s3, 16 }
  0x18   :  { %p2479_p8 = scmp.ne.s32.totalorder %s4129_s3, %s2478_s23  ;;  %p2482_p9 = scmp.lt.u32.totalorder %s2478_s23, %s4129_s3 }
  0x1a   :  { %p2484_p10 = pnand %p2482_p9, %p2479_p8 }
  0x1c   :  { %2487 = shalt.err (!%p2484_p10)
}
  0x1d   :  { %s2488_s29 = scalar_lea.vmem %s2730_s30, 16  ;;  %s2492_s1 = scalar_lea.vmem %s2730_s30, 32 }
  0x1e   :  { %p2489_p11 = scmp.ne.s32.totalorder %s2730_s30, %s2488_s29  ;;  %p2493_p12 = scmp.lt.s32.totalorder %s2730_s30, %s2730_s30 }
  0x1f   :  { %p2494_p13 = scmp.lt.s32.totalorder %s2492_s1, %s2488_s29 }
  0x21   :  { %p2495_p0 = por %p2494_p13, %p2493_p12 }
  0x23   :  { %p2496_p1 = pnand %p2495_p0, %p2489_p11 }
  0x25   :  { %2499 = shalt.err (!%p2496_p1)
}
  0x26   :  { %64 = dma.hbm_to_vmem [thread:$0]  %s4129_s3, 16, %s2730_s30, [#allocation9]  }
  0x27   :  { %s2670_s10 = smov [#allocation11]   ;;  %s2671_s12 = smov [#allocation2]  }
  0x28   :  { %s81_s11 = sshll.u32 %s2670_s10, 4  ;;  %s24_s13 = sshll.u32 %s2671_s12, 4  ;;  %s82_s11 = int_to_ptr.vmem [resolvable:$true] %s81_s11  ;;  %s2765_s13 = int_to_ptr.vmem [resolvable:$true] %s24_s13 }
  0x29   :  { %s2500_s16 = scalar_lea.hbm %s4131_s5, 32 }
  0x2a   :  { %p2501_p2 = scmp.ne.s32.totalorder %s4131_s5, %s2500_s16  ;;  %p2504_p3 = scmp.lt.u32.totalorder %s2500_s16, %s4131_s5 }
  0x2c   :  { %p2506_p4 = pnand %p2504_p3, %p2501_p2 }
  0x2e   :  { %2509 = shalt.err (!%p2506_p4)
}
  0x2f   :  { %s2510_s3 = scalar_lea.vmem %s82_s11, 32  ;;  %p2515_p6 = scmp.lt.s32.totalorder %s82_s11, %s82_s11 }
  0x30   :  { %p2511_p5 = scmp.ne.s32.totalorder %s82_s11, %s2510_s3  ;;  %p2516_p7 = scmp.lt.s32.totalorder %s2510_s3, %s2510_s3 }
  0x32   :  { %p2517_p8 = por %p2516_p7, %p2515_p6 }
  0x34   :  { %p2518_p9 = pnand %p2517_p8, %p2511_p5 }
  0x36   :  { %2521 = shalt.err (!%p2518_p9)
}
  0x37   :  { %84 = dma.hbm_to_vmem [thread:$0]  %s4131_s5, 32, %s82_s11, [#allocation12]  }
  0x38   :  { %s2522_s26 = scalar_lea.hbm %s4126_s0, 4096 }
  0x39   :  { %p2523_p10 = scmp.ne.s32.totalorder %s4126_s0, %s2522_s26  ;;  %p2526_p11 = scmp.lt.u32.totalorder %s2522_s26, %s4126_s0 }
  0x3b   :  { %p2528_p12 = pnand %p2526_p11, %p2523_p10 }
  0x3d   :  { %2531 = shalt.err (!%p2528_p12)
}
  0x3e   :  { %s2532_s9 = scalar_lea.vmem %s2765_s13, 4096  ;;  %p2537_p0 = scmp.lt.s32.totalorder %s2765_s13, %s2765_s13 }
  0x3f   :  { %p2533_p13 = scmp.ne.s32.totalorder %s2765_s13, %s2532_s9  ;;  %p2538_p1 = scmp.lt.s32.totalorder %s2532_s9, %s2532_s9 }
  0x41   :  { %p2539_p2 = por %p2538_p1, %p2537_p0 }
  0x43   :  { %p2540_p3 = pnand %p2539_p2, %p2533_p13 }
  0x45   :  { %2543 = shalt.err (!%p2540_p3)
}
  0x46   :  { %30 = dma.hbm_to_vmem [thread:$0]  %s4126_s0, 4096, %s2765_s13, [#allocation3], %s2668_s17, %s2668_s17, %s2669_s18  }
  0x47   :  { %s2672_s11 = smov [#allocation7]   ;;  %s2544_s16 = scalar_lea.hbm %s4128_s2, 4096 }
  0x48   :  { %s48_s12 = sshll.u32 %s2672_s11, 4  ;;  %p2545_p4 = scmp.ne.s32.totalorder %s4128_s2, %s2544_s16  ;;  %s49_s12 = int_to_ptr.vmem [resolvable:$true] %s48_s12 }
  0x49   :  { %p2548_p5 = scmp.lt.u32.totalorder %s2544_s16, %s4128_s2 }
  0x4b   :  { %p2550_p6 = pnand %p2548_p5, %p2545_p4 }
  0x4d   :  { %2553 = shalt.err (!%p2550_p6)
}
  0x4e   :  { %s2554_s3 = scalar_lea.vmem %s49_s12, 4096  ;;  %p2559_p8 = scmp.lt.s32.totalorder %s49_s12, %s49_s12 }
  0x4f   :  { %p2555_p7 = scmp.ne.s32.totalorder %s49_s12, %s2554_s3  ;;  %p2560_p9 = scmp.lt.s32.totalorder %s2554_s3, %s2554_s3 }
  0x51   :  { %p2561_p10 = por %p2560_p9, %p2559_p8 }
  0x53   :  { %p2562_p11 = pnand %p2561_p10, %p2555_p7 }
  0x55   :  { %2565 = shalt.err (!%p2562_p11)
}
  0x56   :  { %s2673_s0 = smov 128   ;;  %s2674_s13 = smov 8  }
  0x57   :  { %54 = dma.hbm_to_vmem [thread:$0]  %s4128_s2, 4096, %s49_s12, [#allocation6], %s2673_s0, %s2673_s0, %s2674_s13  }
  0x58   :  { %s2675_s24 = smov [#allocation10]   ;;  %s2676_s26 = smov [#allocation13]  }
  0x59   :  { %s71_s25 = sshll.u32 %s2675_s24, 4  ;;  %s91_s27 = sshll.u32 %s2676_s26, 4  ;;  %s72_s25 = int_to_ptr.vmem [resolvable:$true] %s71_s25  ;;  %s92_s27 = int_to_ptr.vmem [resolvable:$true] %s91_s27 }
  0x5a   :  { %s2566_s28 = scalar_lea.hbm %s4130_s4, 32 }
  0x5b   :  { %p2567_p12 = scmp.ne.s32.totalorder %s4130_s4, %s2566_s28  ;;  %p2570_p13 = scmp.lt.u32.totalorder %s2566_s28, %s4130_s4 }
  0x5d   :  { %p2572_p0 = pnand %p2570_p13, %p2567_p12 }
  0x5f   :  { %2575 = shalt.err (!%p2572_p0)
}
  0x60   :  { %s2576_s2 = scalar_lea.vmem %s72_s25, 32  ;;  %p2581_p2 = scmp.lt.s32.totalorder %s72_s25, %s72_s25 }
  0x61   :  { %p2577_p1 = scmp.ne.s32.totalorder %s72_s25, %s2576_s2  ;;  %p2582_p3 = scmp.lt.s32.totalorder %s2576_s2, %s2576_s2 }
  0x63   :  { %p2583_p4 = por %p2582_p3, %p2581_p2 }
  0x65   :  { %p2584_p5 = pnand %p2583_p4, %p2577_p1 }
  0x67   :  { %2587 = shalt.err (!%p2584_p5)
}
  0x68   :  { %74 = dma.hbm_to_vmem [thread:$0]  %s4130_s4, 32, %s72_s25, [#allocation9]  }
  0x69   :  { %s2588_s19 = scalar_lea.hbm %s4132_s6, 64 }
  0x6a   :  { %p2589_p6 = scmp.ne.s32.totalorder %s4132_s6, %s2588_s19  ;;  %p2592_p7 = scmp.lt.u32.totalorder %s2588_s19, %s4132_s6 }
  0x6c   :  { %p2594_p8 = pnand %p2592_p7, %p2589_p6 }
  0x6e   :  { %2597 = shalt.err (!%p2594_p8)
}
  0x6f   :  { %s2598_s0 = scalar_lea.vmem %s92_s27, 64  ;;  %p2603_p10 = scmp.lt.s32.totalorder %s92_s27, %s92_s27 }
  0x70   :  { %p2599_p9 = scmp.ne.s32.totalorder %s92_s27, %s2598_s0  ;;  %p2604_p11 = scmp.lt.s32.totalorder %s2598_s0, %s2598_s0 }
  0x72   :  { %p2605_p12 = por %p2604_p11, %p2603_p10 }
  0x74   :  { %p2606_p13 = pnand %p2605_p12, %p2599_p9 }
  0x76   :  { %2609 = shalt.err (!%p2606_p13)
}
  0x77   :  { %94 = dma.hbm_to_vmem [thread:$0]  %s4132_s6, 64, %s92_s27, [#allocation12]  }
  0x78   :  { %s2677_s30 = smov [#allocation14]   ;;  %s2610_s26 = scalar_lea.hbm %s4133_s7, 8192 }
  0x79   :  { %s100_s23 = sshll.u32 %s2677_s30, 4  ;;  %p2611_p0 = scmp.ne.s32.totalorder %s4133_s7, %s2610_s26  ;;  %s101_s23 = int_to_ptr.vmem [resolvable:$true] %s100_s23 }
  0x7a   :  { %p2614_p1 = scmp.lt.u32.totalorder %s2610_s26, %s4133_s7 }
  0x7c   :  { %p2616_p2 = pnand %p2614_p1, %p2611_p0 }
  0x7e   :  { %2619 = shalt.err (!%p2616_p2)
}
  0x7f   :  { %s2620_s5 = scalar_lea.vmem %s101_s23, 8192  ;;  %p2625_p4 = scmp.lt.s32.totalorder %s101_s23, %s101_s23 }
  0x80   :  { %p2621_p3 = scmp.ne.s32.totalorder %s101_s23, %s2620_s5  ;;  %p2626_p5 = scmp.lt.s32.totalorder %s2620_s5, %s2620_s5 }
  0x82   :  { %p2627_p6 = por %p2626_p5, %p2625_p4 }
  0x84   :  { %p2628_p7 = pnand %p2627_p6, %p2621_p3 }
  0x86   :  { %2631 = shalt.err (!%p2628_p7)
}
  0x87   :  { %106 = dma.hbm_to_vmem [thread:$0]  %s4133_s7, 8192, %s101_s23, [#allocation15], %s2668_s17, %s2668_s17, %s2669_s18  }
  0x88   :  { %2654 = dma.done.wait [#allocation3], 4096  }
  0x89   :  { %2655 = vsyncadd [#allocation3], 4294963200 }
  0x8a   :  { %2656 = dma.done.wait [#allocation6], 8192  }
  0x8b   :  { %2657 = vsyncadd [#allocation6], 4294959104 }
  0x8c   :  { %2658 = dma.done.wait [#allocation9], 48  }
  0x8d   :  { %2659 = vsyncadd [#allocation9], 4294967248 }
  0x8e   :  { %2660 = dma.done.wait [#allocation12], 96  }
  0x8f   :  { %2661 = vsyncadd [#allocation12], 4294967200 }
  0x90   :  { %2662 = dma.done.wait [#allocation15], 8192  }
  0x91   :  { %2663 = vsyncadd [#allocation15], 4294959104  ;;  %v211_v0 = vld [vmem:[#allocation7 + $0x80] sm:$0xff]  ;;  %v212_v1 = vld [vmem:[#allocation7 + $0x88] sm:$0xff]  ;;  %s2678_s7 = smov 1   ;;  %s2679_s10 = smov 127  }
  0x92   :  { %v195_v2 = vld [vmem:[#allocation7] sm:$0xff]  ;;  %v2088_v3 = vpack.c.bf16 %v212_v1, %v211_v0  ;;  %v196_v4 = vld [vmem:[#allocation7 + $0x8] sm:$0xff]  ;;  %v213_v5 = vld [vmem:[#allocation7 + $0x90] sm:$0xff]  ;;  %vm1077_vm2 = vcmask 523264   ;;  %s2684_s11 = smov [#allocation16]  }
  0x93   :  { %v214_v6 = vld [vmem:[#allocation7 + $0x98] sm:$0xff]  ;;  %v2090_v7 = vpack.c.bf16 %v196_v4, %v195_v2  ;;  %v197_v9 = vld [vmem:[#allocation7 + $0x10] sm:$0xff]  ;;  %v215_v11 = vld [vmem:[#allocation7 + $0xa0] sm:$0xff]  ;;  %s1975_s2 = sshll.u32 %s2684_s11, 4  ;;  %s1976_s2 = int_to_ptr.vmem [resolvable:$true] %s1975_s2 }
  0x94   :  { %v2092_v8 = vpack.c.bf16 %v214_v6, %v213_v5  ;;  %v198_v10 = vld [vmem:[#allocation7 + $0x18] sm:$0xff]  ;;  %2089 = vmatprep.subr.bf16.mxu0 %v2088_v3  ;;  %v216_v12 = vld [vmem:[#allocation7 + $0xa8] sm:$0xff]  ;;  %v199_v15 = vld [vmem:[#allocation7 + $0x20] sm:$0xff]  ;;  %s2632_s12 = scalar_lea.vmem %s1976_s2, 4096  ;;  %p2637_p9 = scmp.lt.s32.totalorder %s1976_s2, %s1976_s2 }
  0x95   :  { %2091 = vmatpush3.bf16.msra.mxu0 %v2090_v7  ;;  %v2094_v13 = vpack.c.bf16 %v198_v10, %v197_v9  ;;  %v2096_v14 = vpack.c.bf16 %v216_v12, %v215_v11  ;;  %v200_v16 = vld [vmem:[#allocation7 + $0x28] sm:$0xff]  ;;  %v217_v17 = vld [vmem:[#allocation7 + $0xb0] sm:$0xff]  ;;  %v218_v18 = vld [vmem:[#allocation7 + $0xb8] sm:$0xff]  ;;  %p2633_p8 = scmp.ne.s32.totalorder %s1976_s2, %s2632_s12  ;;  %p2638_p10 = scmp.lt.s32.totalorder %s2632_s12, %s2632_s12 }
  0x96   :  { %2093 = vmatprep.subr.bf16.mxu0 %v2092_v8  ;;  %v2098_v19 = vpack.c.bf16 %v200_v16, %v199_v15  ;;  %v2100_v20 = vpack.c.bf16 %v218_v18, %v217_v17  ;;  %v201_v21 = vld [vmem:[#allocation7 + $0x30] sm:$0xff]  ;;  %v202_v22 = vld [vmem:[#allocation7 + $0x38] sm:$0xff]  ;;  %v219_v23 = vld [vmem:[#allocation7 + $0xc0] sm:$0xff] }
  0x97   :  { %v220_v24 = vld [vmem:[#allocation7 + $0xc8] sm:$0xff]  ;;  %v2102_v26 = vpack.c.bf16 %v202_v22, %v201_v21  ;;  %v203_v28 = vld [vmem:[#allocation7 + $0x40] sm:$0xff]  ;;  %v221_v30 = vld [vmem:[#allocation7 + $0xd0] sm:$0xff]  ;;  %p2639_p11 = por %p2638_p10, %p2637_p9 }
  0x98   :  { %v132_v25 = vld [vmem:[#allocation2 + $0x8] sm:$0xff]  ;;  %v2104_v27 = vpack.c.bf16 %v220_v24, %v219_v23  ;;  %v222_v31 = vld [vmem:[#allocation7 + $0xd8] sm:$0xff]  ;;  %v205_v34 = vld [vmem:[#allocation7 + $0x50] sm:$0xff] }
  0x99   :  { %2095 = vmatpush3.bf16.msra.mxu0 %v2094_v13  ;;  %298 = vmatprep.mubr.f32.mxu0 %v132_v25  ;;  %v204_v29 = vld [vmem:[#allocation7 + $0x48] sm:$0xff]  ;;  %v2108_v33 = vpack.c.bf16 %v222_v31, %v221_v30  ;;  %v206_v35 = vld [vmem:[#allocation7 + $0x58] sm:$0xff]  ;;  %v223_v36 = vld [vmem:[#allocation7 + $0xe0] sm:$0xff]  ;;  %p2640_p12 = pnand %p2639_p11, %p2633_p8 }
  0x9a   :  { %2097 = vmatprep.subr.bf16.mxu0 %v2096_v14  ;;  %v2106_v32 = vpack.c.bf16 %v204_v29, %v203_v28  ;;  %v224_v37 = vld [vmem:[#allocation7 + $0xe8] sm:$0xff]  ;;  %v2110_v38 = vpack.c.bf16 %v206_v35, %v205_v34  ;;  %v207_v39 = vld [vmem:[#allocation7 + $0x60] sm:$0xff]  ;;  %v2852_v43 = vld [vmem:[#allocation5 + $0x10] sm:$0xff] }
  0x9b   :  { %v2112_v40 = vpack.c.bf16 %v224_v37, %v223_v36  ;;  %v208_v41 = vld [vmem:[#allocation7 + $0x68] sm:$0xff]  ;;  %v2850_v42 = vld [vmem:[#allocation5] sm:$0xff]  ;;  %v225_v44 = vld [vmem:[#allocation7 + $0xf0] sm:$0xff]  ;;  %382 = vrot.lane.b32.xlu0 %v2852_v43, %s2678_s7 }
  0x9c   :  { %v226_v45 = vld [vmem:[#allocation7 + $0xf8] sm:$0xff]  ;;  %380 = vrot.lane.b32.xlu1 %v2850_v42, %s2678_s7  ;;  %v2858_v46 = vld [vmem:[#allocation5 + $0x8] sm:$0xff]  ;;  %v2114_v48 = vpack.c.bf16 %v208_v41, %v207_v39  ;;  %v209_v50 = vld [vmem:[#allocation7 + $0x70] sm:$0xff] }
  0x9d   :  { %2099 = vmatpush3.bf16.msra.mxu0 %v2098_v19  ;;  %v2860_v47 = vld [vmem:[#allocation5 + $0x18] sm:$0xff]  ;;  %v2116_v49 = vpack.c.bf16 %v226_v45, %v225_v44  ;;  %v131_v53 = vld [vmem:[#allocation2] sm:$0xff]  ;;  %v2876_v56 = vld [vmem:[#allocation5 + $0x30] sm:$0xff] }
  0x9e   :  { %2101 = vmatprep.subr.bf16.mxu0 %v2100_v20  ;;  %v210_v51 = vld [vmem:[#allocation7 + $0x78] sm:$0xff]  ;;  %v2874_v55 = vld [vmem:[#allocation5 + $0x20] sm:$0xff]  ;;  %v133_v57 = vld [vmem:[#allocation2 + $0x10] sm:$0xff] }
  0x9f   :  { %414 = vrot.lane.b32.xlu0 %v2860_v47, %s2678_s7  ;;  %v2118_v52 = vpack.c.bf16 %v210_v51, %v209_v50  ;;  %v134_v54 = vld [vmem:[#allocation2 + $0x18] sm:$0xff]  ;;  %v136_v58 = vld [vmem:[#allocation2 + $0x28] sm:$0xff]  ;;  %v135_v61 = vld [vmem:[#allocation2 + $0x20] sm:$0xff] }
  0xa0   :  { %412 = vrot.lane.b32.xlu1 %v2858_v46, %s2678_s7  ;;  %v2882_v59 = vld [vmem:[#allocation5 + $0x28] sm:$0xff]  ;;  %v2884_v60 = vld [vmem:[#allocation5 + $0x38] sm:$0xff]  ;;  %v137_v63 = vld [vmem:[#allocation2 + $0x30] sm:$0xff] }
  0xa1   :  { %2103 = vmatpush3.bf16.msra.mxu0 %v2102_v26  ;;  %v138_v62 = vld [vmem:[#allocation2 + $0x38] sm:$0xff]  ;;  %v140_v0 = vld [vmem:[#allocation2 + $0x48] sm:$0xff]  ;;  %v139_v1 = vld [vmem:[#allocation2 + $0x40] sm:$0xff] }
  0xa2   :  { %2105 = vmatprep.subr.bf16.mxu0 %v2104_v27  ;;  %v142_v2 = vld [vmem:[#allocation2 + $0x58] sm:$0xff]  ;;  %v2898_v3 = vld [vmem:[#allocation5 + $0x40] sm:$0xff]  ;;  %v173_v4 = vld [vmem:[#allocation5 + $0x50] sm:$0xff] }
  0xa3   :  { %530 = vrot.lane.b32.xlu0 %v2850_v42, %s2679_s10  ;;  %v141_v5 = vld [vmem:[#allocation2 + $0x50] sm:$0xff]  ;;  %v144_v6 = vld [vmem:[#allocation2 + $0x68] sm:$0xff]  ;;  %v2905_v8 = vld [vmem:[#allocation5 + $0x58] sm:$0xff] }
  0xa4   :  { %532 = vrot.lane.b32.xlu1 %v2852_v43, %s2679_s10  ;;  %v2903_v7 = vld [vmem:[#allocation5 + $0x48] sm:$0xff]  ;;  %v143_v9 = vld [vmem:[#allocation2 + $0x60] sm:$0xff]  ;;  %v146_v10 = vld [vmem:[#allocation2 + $0x78] sm:$0xff] }
  0xa5   :  { %2107 = vmatpush3.bf16.msra.mxu0 %v2106_v32  ;;  %v145_v11 = vld [vmem:[#allocation2 + $0x70] sm:$0xff]  ;;  %v148_v12 = vld [vmem:[#allocation2 + $0x88] sm:$0xff]  ;;  %v147_v13 = vld [vmem:[#allocation2 + $0x80] sm:$0xff] }
  0xa6   :  { %2109 = vmatprep.subr.bf16.mxu0 %v2108_v33  ;;  %v150_v14 = vld [vmem:[#allocation2 + $0x98] sm:$0xff]  ;;  %v175_v15 = vld [vmem:[#allocation5 + $0x60] sm:$0xff]  ;;  %v177_v16 = vld [vmem:[#allocation5 + $0x70] sm:$0xff] }
  0xa7   :  { %562 = vrot.lane.b32.xlu0 %v2858_v46, %s2679_s10  ;;  %v149_v17 = vld [vmem:[#allocation2 + $0x90] sm:$0xff]  ;;  %v152_v18 = vld [vmem:[#allocation2 + $0xa8] sm:$0xff]  ;;  %v178_v20 = vld [vmem:[#allocation5 + $0x78] sm:$0xff] }
  0xa8   :  { %564 = vrot.lane.b32.xlu1 %v2860_v47, %s2679_s10  ;;  %v2920_v19 = vld [vmem:[#allocation5 + $0x68] sm:$0xff]  ;;  %v151_v21 = vld [vmem:[#allocation2 + $0xa0] sm:$0xff]  ;;  %v154_v22 = vld [vmem:[#allocation2 + $0xb8] sm:$0xff] }
  0xa9   :  { %2111 = vmatpush3.bf16.msra.mxu0 %v2110_v38  ;;  %v153_v23 = vld [vmem:[#allocation2 + $0xb0] sm:$0xff]  ;;  %v156_v24 = vld [vmem:[#allocation2 + $0xc8] sm:$0xff]  ;;  %v155_v25 = vld [vmem:[#allocation2 + $0xc0] sm:$0xff] }
  0xaa   :  { %2113 = vmatprep.subr.bf16.mxu0 %v2112_v40  ;;  %v158_v26 = vld [vmem:[#allocation2 + $0xd8] sm:$0xff]  ;;  %v179_v27 = vld [vmem:[#allocation5 + $0x80] sm:$0xff]  ;;  %v181_v28 = vld [vmem:[#allocation5 + $0x90] sm:$0xff] }
  0xab   :  { %386 = vrot.lane.b32.xlu0 %v2876_v56, %s2678_s7  ;;  %v157_v29 = vld [vmem:[#allocation2 + $0xd0] sm:$0xff]  ;;  %v160_v30 = vld [vmem:[#allocation2 + $0xe8] sm:$0xff]  ;;  %v182_v32 = vld [vmem:[#allocation5 + $0x98] sm:$0xff] }
  0xac   :  { %384 = vrot.lane.b32.xlu1 %v2874_v55, %s2678_s7  ;;  %v180_v31 = vld [vmem:[#allocation5 + $0x88] sm:$0xff]  ;;  %v159_v33 = vld [vmem:[#allocation2 + $0xe0] sm:$0xff]  ;;  %v162_v34 = vld [vmem:[#allocation2 + $0xf8] sm:$0xff] }
  0xad   :  { %2115 = vmatpush3.bf16.msra.mxu0 %v2114_v48  ;;  %v161_v35 = vld [vmem:[#allocation2 + $0xf0] sm:$0xff]  ;;  %v183_v36 = vld [vmem:[#allocation5 + $0xa0] sm:$0xff]  ;;  %v184_v38 = vld [vmem:[#allocation5 + $0xa8] sm:$0xff]  ;;  %v4136_v48 = vmov 65  }
  0xae   :  { %2117 = vmatprep.subr.bf16.mxu0 %v2116_v49  ;;  %v185_v37 = vld [vmem:[#allocation5 + $0xb0] sm:$0xff]  ;;  %v186_v39 = vld [vmem:[#allocation5 + $0xb8] sm:$0xff]  ;;  %v187_v40 = vld [vmem:[#allocation5 + $0xc0] sm:$0xff]  ;;  %2332 = vset.pattern.permute.xlu1 %v4136_v48  ;;  %v4138_v49 = vmov 64  }
  0xaf   :  { %418 = vrot.lane.b32.xlu0 %v2884_v60, %s2678_s7  ;;  %v189_v41 = vld [vmem:[#allocation5 + $0xd0] sm:$0xff]  ;;  %v188_v44 = vld [vmem:[#allocation5 + $0xc8] sm:$0xff]  ;;  %v190_v45 = vld [vmem:[#allocation5 + $0xd8] sm:$0xff] }
  0xb0   :  { %416 = vrot.lane.b32.xlu1 %v2882_v59, %s2678_s7  ;;  %2331 = vset.pattern.permute.xlu0 %v4138_v49  ;;  %v191_v50 = vld [vmem:[#allocation5 + $0xe0] sm:$0xff]  ;;  %v193_v51 = vld [vmem:[#allocation5 + $0xf0] sm:$0xff] }
  0xb1   :  { %2119 = vmatpush3.bf16.msra.mxu0 %v2118_v52  ;;  %v4135_v52 = vlaneseq }
  0xb3   :  { %534 = vrot.lane.b32.xlu0 %v2874_v55, %s2679_s10 }
  0xb4   :  { %299 = vmatmul.mubr.f32.vlgmr.msra.gmra.mrb[0].mxu0 %v131_v53  ;;  %536 = vrot.lane.b32.xlu1 %v2876_v56, %s2679_s10  ;;  %v2958_v53 = vld [vmem:[#allocation5 + $0xe8] sm:$0xff] }
  0xb5   :  { %303 = vmatprep.mubr.f32.mxu0 %v134_v54  ;;  %v2960_v54 = vld [vmem:[#allocation5 + $0xf8] sm:$0xff] }
  0xb7   :  { %566 = vrot.lane.b32.xlu0 %v2882_v59, %s2679_s10 }
  0xb8   :  { %304 = vmatmul.mubr.f32.gmra.mrb[2].mxu0 %v133_v57  ;;  %568 = vrot.lane.b32.xlu1 %v2884_v60, %s2679_s10 }
  0xb9   :  { %308 = vmatprep.mubr.f32.mxu0 %v136_v58  ;;  %v2965_v58 = vand.u32 127, %v4135_v52 }
  0xbb   :  { %390 = vrot.lane.b32.xlu0 %v173_v4, %s2678_s7  ;;  %vm446_vm0 = vcmp.lt.s32.totalorder %v2965_v58, 1  ;;  %vm594_vm1 = vcmp.lt.s32.totalorder %v2965_v58, 127 }
  0xbc   :  { %309 = vmatmul.mubr.f32.gmra.mrb[4].mxu0 %v135_v61  ;;  %388 = vrot.lane.b32.xlu1 %v2898_v3, %s2678_s7 }
  0xbd   :  { %313 = vmatprep.mubr.f32.mxu0 %v138_v62 }
  0xbf   :  { %422 = vrot.lane.b32.xlu0 %v2905_v8, %s2678_s7 }
  0xc0   :  { %314 = vmatmul.mubr.f32.gmra.mrb[6].mxu0 %v137_v63  ;;  %420 = vrot.lane.b32.xlu1 %v2903_v7, %s2678_s7 }
  0xc1   :  { %318 = vmatprep.mubr.f32.mxu0 %v140_v0 }
  0xc3   :  { %538 = vrot.lane.b32.xlu0 %v2898_v3, %s2679_s10 }
  0xc4   :  { %319 = vmatmul.mubr.f32.gmra.mrb[8].mxu0 %v139_v1  ;;  %540 = vrot.lane.b32.xlu1 %v173_v4, %s2679_s10 }
  0xc5   :  { %323 = vmatprep.mubr.f32.mxu0 %v142_v2 }
  0xc7   :  { %570 = vrot.lane.b32.xlu0 %v2903_v7, %s2679_s10 }
  0xc8   :  { %324 = vmatmul.mubr.f32.gmra.mrb[10].mxu0 %v141_v5  ;;  %572 = vrot.lane.b32.xlu1 %v2905_v8, %s2679_s10 }
  0xc9   :  { %328 = vmatprep.mubr.f32.mxu0 %v144_v6 }
  0xcb   :  { %394 = vrot.lane.b32.xlu0 %v177_v16, %s2678_s7 }
  0xcc   :  { %329 = vmatmul.mubr.f32.gmra.mrb[12].mxu0 %v143_v9  ;;  %392 = vrot.lane.b32.xlu1 %v175_v15, %s2678_s7 }
  0xcd   :  { %333 = vmatprep.mubr.f32.mxu0 %v146_v10 }
  0xcf   :  { %426 = vrot.lane.b32.xlu0 %v178_v20, %s2678_s7 }
  0xd0   :  { %334 = vmatmul.mubr.f32.gmra.mrb[14].mxu0 %v145_v11  ;;  %424 = vrot.lane.b32.xlu1 %v2920_v19, %s2678_s7 }
  0xd1   :  { %338 = vmatprep.mubr.f32.mxu0 %v148_v12 }
  0xd3   :  { %544 = vrot.lane.b32.xlu0 %v177_v16, %s2679_s10 }
  0xd4   :  { %339 = vmatmul.mubr.f32.gmra.mrb[16].mxu0 %v147_v13  ;;  %542 = vrot.lane.b32.xlu1 %v175_v15, %s2679_s10 }
  0xd5   :  { %343 = vmatprep.mubr.f32.mxu0 %v150_v14 }
  0xd7   :  { %576 = vrot.lane.b32.xlu0 %v178_v20, %s2679_s10 }
  0xd8   :  { %344 = vmatmul.mubr.f32.gmra.mrb[18].mxu0 %v149_v17  ;;  %574 = vrot.lane.b32.xlu1 %v2920_v19, %s2679_s10 }
  0xd9   :  { %348 = vmatprep.mubr.f32.mxu0 %v152_v18 }
  0xdb   :  { %398 = vrot.lane.b32.xlu0 %v181_v28, %s2678_s7 }
  0xdc   :  { %349 = vmatmul.mubr.f32.gmra.mrb[20].mxu0 %v151_v21  ;;  %396 = vrot.lane.b32.xlu1 %v179_v27, %s2678_s7 }
  0xdd   :  { %353 = vmatprep.mubr.f32.mxu0 %v154_v22 }
  0xdf   :  { %430 = vrot.lane.b32.xlu0 %v182_v32, %s2678_s7 }
  0xe0   :  { %354 = vmatmul.mubr.f32.gmra.mrb[22].mxu0 %v153_v23  ;;  %428 = vrot.lane.b32.xlu1 %v180_v31, %s2678_s7 }
  0xe1   :  { %358 = vmatprep.mubr.f32.mxu0 %v156_v24 }
  0xe3   :  { %546 = vrot.lane.b32.xlu0 %v179_v27, %s2679_s10 }
  0xe4   :  { %359 = vmatmul.mubr.f32.gmra.mrb[24].mxu0 %v155_v25  ;;  %548 = vrot.lane.b32.xlu1 %v181_v28, %s2679_s10 }
  0xe5   :  { %363 = vmatprep.mubr.f32.mxu0 %v158_v26 }
  0xe7   :  { %578 = vrot.lane.b32.xlu0 %v180_v31, %s2679_s10 }
  0xe8   :  { %364 = vmatmul.mubr.f32.gmra.mrb[26].mxu0 %v157_v29  ;;  %580 = vrot.lane.b32.xlu1 %v182_v32, %s2679_s10 }
  0xe9   :  { %368 = vmatprep.mubr.f32.mxu0 %v160_v30 }
  0xeb   :  { %402 = vrot.lane.b32.xlu0 %v185_v37, %s2678_s7 }
  0xec   :  { %369 = vmatmul.mubr.f32.gmra.mrb[28].mxu0 %v159_v33  ;;  %400 = vrot.lane.b32.xlu1 %v183_v36, %s2678_s7 }
  0xed   :  { %373 = vmatprep.mubr.f32.mxu0 %v162_v34 }
  0xef   :  { %434 = vrot.lane.b32.xlu0 %v186_v39, %s2678_s7 }
  0xf0   :  { %374 = vmatmul.mubr.f32.gmra.mrb[30].mxu0 %v161_v35  ;;  %432 = vrot.lane.b32.xlu1 %v184_v38, %s2678_s7 }
  0xf3   :  { %550 = vrot.lane.b32.xlu0 %v183_v36, %s2679_s10 }
  0xf4   :  { %552 = vrot.lane.b32.xlu1 %v185_v37, %s2679_s10 }
  0xf7   :  { %582 = vrot.lane.b32.xlu0 %v184_v38, %s2679_s10 }
  0xf8   :  { %584 = vrot.lane.b32.xlu1 %v186_v39, %s2679_s10 }
  0xfb   :  { %406 = vrot.lane.b32.xlu0 %v189_v41, %s2678_s7 }
  0xfc   :  { %404 = vrot.lane.b32.xlu1 %v187_v40, %s2678_s7 }
  0xff   :  { %438 = vrot.lane.b32.xlu0 %v190_v45, %s2678_s7 }
 0x100   :  { %436 = vrot.lane.b32.xlu1 %v188_v44, %s2678_s7 }
 0x103   :  { %554 = vrot.lane.b32.xlu0 %v187_v40, %s2679_s10 }
 0x104   :  { %556 = vrot.lane.b32.xlu1 %v189_v41, %s2679_s10 }
 0x107   :  { %586 = vrot.lane.b32.xlu0 %v188_v44, %s2679_s10 }
 0x108   :  { %588 = vrot.lane.b32.xlu1 %v190_v45, %s2679_s10 }
 0x10b   :  { %410 = vrot.lane.b32.xlu0 %v193_v51, %s2678_s7 }
 0x10c   :  { %408 = vrot.lane.b32.xlu1 %v191_v50, %s2678_s7 }
 0x10d   :  { %v383_v61 = vpop.permute.xlu0 %382 }
 0x10e   :  { %v2962_v57 = vpop.permute.xlu1 %380 }
 0x10f   :  { %442 = vrot.lane.b32.xlu0 %v2960_v54, %s2678_s7 }
 0x110   :  { %440 = vrot.lane.b32.xlu1 %v2958_v53, %s2678_s7 }
 0x111   :  { %v415_v63 = vpop.permute.xlu0 %414 }
 0x112   :  { %v2972_v62 = vpop.permute.xlu1 %412  ;;  %v2976_v0 = vsel %vm446_vm0, %v383_v61, %v415_v63  ;;  %v2980_v1 = vsel %vm446_vm0, %v415_v63, %v383_v61 }
 0x113   :  { %560 = vrot.lane.b32.xlu0 %v193_v51, %s2679_s10 }
 0x114   :  { %558 = vrot.lane.b32.xlu1 %v191_v50, %s2679_s10 }
 0x115   :  { %v531_v4 = vpop.permute.xlu0 %530 }
 0x116   :  { %v2984_v2 = vpop.permute.xlu1 %532 }
 0x119   :  { %v563_v6 = vpop.permute.xlu0 %562 }
 0x11a   :  { %v2987_v5 = vpop.permute.xlu1 %564  ;;  %v2991_v9 = vsel %vm594_vm1, %v531_v4, %v563_v6  ;;  %v2995_v10 = vsel %vm594_vm1, %v563_v6, %v531_v4 }
 0x11d   :  { %v387_v12 = vpop.permute.xlu0 %386 }
 0x11e   :  { %v2997_v11 = vpop.permute.xlu1 %384 }
 0x121   :  { %v419_v14 = vpop.permute.xlu0 %418 }
 0x122   :  { %v2999_v13 = vpop.permute.xlu1 %416  ;;  %v3003_v15 = vsel %vm446_vm0, %v387_v12, %v419_v14  ;;  %v3007_v16 = vsel %vm446_vm0, %v419_v14, %v387_v12 }
 0x125   :  { %v535_v18 = vpop.permute.xlu0 %534 }
 0x126   :  { %v3009_v17 = vpop.permute.xlu1 %536 }
 0x129   :  { %v567_v21 = vpop.permute.xlu0 %566 }
 0x12a   :  { %v3011_v20 = vpop.permute.xlu1 %568  ;;  %v3015_v22 = vsel %vm594_vm1, %v535_v18, %v567_v21  ;;  %v3019_v23 = vsel %vm594_vm1, %v567_v21, %v535_v18 }
 0x12d   :  { %v391_v25 = vpop.permute.xlu0 %390 }
 0x12e   :  { %v3021_v24 = vpop.permute.xlu1 %388 }
 0x131   :  { %v423_v27 = vpop.permute.xlu0 %422 }
 0x132   :  { %v3023_v26 = vpop.permute.xlu1 %420  ;;  %v3027_v28 = vsel %vm446_vm0, %v391_v25, %v423_v27  ;;  %v3031_v29 = vsel %vm446_vm0, %v423_v27, %v391_v25 }
 0x135   :  { %v539_v31 = vpop.permute.xlu0 %538 }
 0x136   :  { %v3033_v30 = vpop.permute.xlu1 %540 }
 0x139   :  { %v571_v33 = vpop.permute.xlu0 %570 }
 0x13a   :  { %v3035_v32 = vpop.permute.xlu1 %572  ;;  %v3039_v34 = vsel %vm594_vm1, %v539_v31, %v571_v33  ;;  %v3043_v35 = vsel %vm594_vm1, %v571_v33, %v539_v31 }
 0x13d   :  { %v395_v37 = vpop.permute.xlu0 %394 }
 0x13e   :  { %v3045_v36 = vpop.permute.xlu1 %392 }
 0x141   :  { %v427_v39 = vpop.permute.xlu0 %426 }
 0x142   :  { %v3047_v38 = vpop.permute.xlu1 %424  ;;  %v3051_v40 = vsel %vm446_vm0, %v395_v37, %v427_v39  ;;  %v3055_v41 = vsel %vm446_vm0, %v427_v39, %v395_v37 }
 0x143   :  { %4171 = vst [vmem:[#allocation23_spill] sm:$0xff] %v3051_v40 }
 0x145   :  { %v545_v45 = vpop.permute.xlu0 %544 }
 0x146   :  { %v543_v44 = vpop.permute.xlu1 %542 }
 0x149   :  { %v577_v51 = vpop.permute.xlu0 %576 }
 0x14a   :  { %v575_v50 = vpop.permute.xlu1 %574  ;;  %v3067_v4 = vsel %vm594_vm1, %v545_v45, %v577_v51  ;;  %v3071_v6 = vsel %vm594_vm1, %v577_v51, %v545_v45 }
 0x14b   :  { %v3059_v61 = vsel %vm594_vm1, %v543_v44, %v575_v50  ;;  %v3063_v63 = vsel %vm594_vm1, %v575_v50, %v543_v44  ;;  %4173 = vst [vmem:[#allocation25_spill] sm:$0xff] %v3067_v4  ;;  %4174 = vst [vmem:[#allocation26_spill] sm:$0xff] %v3071_v6 }
 0x14c   :  { %4172 = vst [vmem:[#allocation24_spill] sm:$0xff] %v3063_v63 }
 0x14d   :  { %v399_v14 = vpop.permute.xlu0 %398 }
 0x14e   :  { %v397_v12 = vpop.permute.xlu1 %396 }
 0x151   :  { %v431_v21 = vpop.permute.xlu0 %430 }
 0x152   :  { %v429_v18 = vpop.permute.xlu1 %428  ;;  %v3083_v31 = vsel %vm446_vm0, %v399_v14, %v431_v21  ;;  %v3087_v33 = vsel %vm446_vm0, %v431_v21, %v399_v14 }
 0x153   :  { %v3075_v25 = vsel %vm446_vm0, %v397_v12, %v429_v18  ;;  %v3079_v27 = vsel %vm446_vm0, %v429_v18, %v397_v12  ;;  %4177 = vst [vmem:[#allocation29_spill] sm:$0xff] %v3083_v31  ;;  %4178 = vst [vmem:[#allocation30_spill] sm:$0xff] %v3087_v33 }
 0x154   :  { %4175 = vst [vmem:[#allocation27_spill] sm:$0xff] %v3075_v25  ;;  %4176 = vst [vmem:[#allocation28_spill] sm:$0xff] %v3079_v27  ;;  %v4210_v25 = vmov 66  }
 0x155   :  { %v547_v39 = vpop.permute.xlu0 %546 }
 0x156   :  { %v549_v37 = vpop.permute.xlu1 %548 }
 0x159   :  { %v579_v45 = vpop.permute.xlu0 %578 }
 0x15a   :  { %v581_v44 = vpop.permute.xlu1 %580  ;;  %v3099_v12 = vsel %vm594_vm1, %v547_v39, %v579_v45  ;;  %v3103_v14 = vsel %vm594_vm1, %v579_v45, %v547_v39 }
 0x15b   :  { %v3091_v50 = vsel %vm594_vm1, %v549_v37, %v581_v44  ;;  %v3095_v51 = vsel %vm594_vm1, %v581_v44, %v549_v37  ;;  %4181 = vst [vmem:[#allocation33_spill] sm:$0xff] %v3099_v12  ;;  %4182 = vst [vmem:[#allocation34_spill] sm:$0xff] %v3103_v14 }
 0x15c   :  { %4179 = vst [vmem:[#allocation31_spill] sm:$0xff] %v3091_v50  ;;  %4180 = vst [vmem:[#allocation32_spill] sm:$0xff] %v3095_v51 }
 0x15d   :  { %v403_v21 = vpop.permute.xlu0 %402 }
 0x15e   :  { %v401_v18 = vpop.permute.xlu1 %400 }
 0x161   :  { %v435_v48 = vpop.permute.xlu0 %434 }
 0x162   :  { %v433_v52 = vpop.permute.xlu1 %432  ;;  %v3115_v44 = vsel %vm446_vm0, %v403_v21, %v435_v48  ;;  %v3119_v39 = vsel %vm446_vm0, %v435_v48, %v403_v21 }
 0x163   :  { %v3107_v49 = vsel %vm446_vm0, %v401_v18, %v433_v52  ;;  %v3111_v37 = vsel %vm446_vm0, %v433_v52, %v401_v18  ;;  %4185 = vst [vmem:[#allocation37_spill] sm:$0xff] %v3115_v44  ;;  %4186 = vst [vmem:[#allocation38_spill] sm:$0xff] %v3119_v39 }
 0x164   :  { %4183 = vst [vmem:[#allocation35_spill] sm:$0xff] %v3107_v49  ;;  %4184 = vst [vmem:[#allocation36_spill] sm:$0xff] %v3111_v37 }
 0x165   :  { %v551_v51 = vpop.permute.xlu0 %550 }
 0x166   :  { %v553_v45 = vpop.permute.xlu1 %552 }
 0x169   :  { %v583_v31 = vpop.permute.xlu0 %582 }
 0x16a   :  { %v585_v50 = vpop.permute.xlu1 %584  ;;  %v3131_v18 = vsel %vm594_vm1, %v551_v51, %v583_v31  ;;  %v3135_v48 = vsel %vm594_vm1, %v583_v31, %v551_v51 }
 0x16b   :  { %v3123_v33 = vsel %vm594_vm1, %v553_v45, %v585_v50  ;;  %v3127_v52 = vsel %vm594_vm1, %v585_v50, %v553_v45  ;;  %4189 = vst [vmem:[#allocation41_spill] sm:$0xff] %v3131_v18  ;;  %4190 = vst [vmem:[#allocation42_spill] sm:$0xff] %v3135_v48 }
 0x16c   :  { %4187 = vst [vmem:[#allocation39_spill] sm:$0xff] %v3123_v33  ;;  %4188 = vst [vmem:[#allocation40_spill] sm:$0xff] %v3127_v52 }
 0x16d   :  { %v407_v44 = vpop.permute.xlu0 %406 }
 0x16e   :  { %v405_v21 = vpop.permute.xlu1 %404 }
 0x171   :  { %v439_v49 = vpop.permute.xlu0 %438 }
 0x172   :  { %v437_v39 = vpop.permute.xlu1 %436  ;;  %v3147_v45 = vsel %vm446_vm0, %v407_v44, %v439_v49  ;;  %v3151_v31 = vsel %vm446_vm0, %v439_v49, %v407_v44 }
 0x173   :  { %v3139_v37 = vsel %vm446_vm0, %v405_v21, %v437_v39  ;;  %v3143_v50 = vsel %vm446_vm0, %v437_v39, %v405_v21  ;;  %4193 = vst [vmem:[#allocation45_spill] sm:$0xff] %v3147_v45  ;;  %4194 = vst [vmem:[#allocation46_spill] sm:$0xff] %v3151_v31  ;;  %v3169_v45 = vld [vmem:[#allocation8] ss:$0 sm:$0xff] }
 0x174   :  { %4191 = vst [vmem:[#allocation43_spill] sm:$0xff] %v3139_v37  ;;  %4192 = vst [vmem:[#allocation44_spill] sm:$0xff] %v3143_v50 }
 0x175   :  { %v555_v52 = vpop.permute.xlu0 %554 }
 0x176   :  { %v557_v51 = vpop.permute.xlu1 %556 }
 0x179   :  { %v587_v48 = vpop.permute.xlu0 %586 }
 0x17a   :  { %v589_v33 = vpop.permute.xlu1 %588  ;;  %v3163_v21 = vsel %vm594_vm1, %v555_v52, %v587_v48  ;;  %v3167_v49 = vsel %vm594_vm1, %v587_v48, %v555_v52 }
 0x17b   :  { %v3155_v18 = vsel %vm594_vm1, %v557_v51, %v589_v33  ;;  %v3159_v39 = vsel %vm594_vm1, %v589_v33, %v557_v51  ;;  %4197 = vst [vmem:[#allocation49_spill] sm:$0xff] %v3163_v21  ;;  %4198 = vst [vmem:[#allocation50_spill] sm:$0xff] %v3167_v49 }
 0x17c   :  { %4195 = vst [vmem:[#allocation47_spill] sm:$0xff] %v3155_v18  ;;  %4196 = vst [vmem:[#allocation48_spill] sm:$0xff] %v3159_v39 }
 0x17d   :  { %v411_v14 = vpop.permute.xlu0 %410 }
 0x17e   :  { %v409_v50 = vpop.permute.xlu1 %408 }
 0x181   :  { %v443_v52 = vpop.permute.xlu0 %442 }
 0x182   :  { %v441_v21 = vpop.permute.xlu1 %440 }
 0x183   :  { %v3178_v48 = vsel %vm446_vm0, %v409_v50, %v441_v21 }
 0x184   :  { %4200 = vst [vmem:[#allocation52_spill] sm:$0xff] %v3178_v48  ;;  %v4141_v48 = vmov 66  }
 0x187   :  { %v2040_v44 = vpop.f32.mrb[0].mxu0 }
 0x188   :  { %v2041_v31 = vpop.f32.mrb[1].mxu0 }
 0x189   :  { %v2042_v37 = vadd.f32 %v2041_v31, %v2040_v44  ;;  %v3182_v31 = vsel %vm446_vm0, %v441_v21, %v409_v50  ;;  %v3190_v44 = vsel %vm446_vm0, %v443_v52, %v411_v14 }
 0x18a   :  { %4201 = vst [vmem:[#allocation53_spill] sm:$0xff] %v3182_v31  ;;  %4203 = vst [vmem:[#allocation55_spill] sm:$0xff] %v3190_v44 }
 0x18b   :  { %v3172_v18 = vadd.f32 %v2042_v37, %v3169_v45  ;;  %v2043_v33 = vpop.f32.mrb[2].mxu0  ;;  %v3186_v37 = vsel %vm446_vm0, %v411_v14, %v443_v52  ;;  %v4205_v14 = vmov 64  }
 0x18c   :  { %v2044_v51 = vpop.f32.mrb[3].mxu0  ;;  %4202 = vst [vmem:[#allocation54_spill] sm:$0xff] %v3186_v37 }
 0x18d   :  { %4199 = vst [vmem:[#allocation51_spill] sm:$0xff] %v3172_v18  ;;  %v2045_v39 = vadd.f32 %v2044_v51, %v2043_v33  ;;  %790 = vperm.xlu1 %2332, %v3172_v18   ;;  %679 = vperm.xlu0 %2331, %v3172_v18  }
 0x18f   :  { %v3193_v33 = vadd.f32 %v2045_v39, %v3169_v45  ;;  %v2046_v51 = vpop.f32.mrb[4].mxu0 }
 0x190   :  { %v2047_v49 = vpop.f32.mrb[5].mxu0 }
 0x191   :  { %4204 = vst [vmem:[#allocation56_spill] sm:$0xff] %v3193_v33  ;;  %794 = vperm.xlu1 %2332, %v3193_v33   ;;  %2333 = vset.pattern.permute.xlu0 %v4141_v48  ;;  %v2048_v50 = vadd.f32 %v2047_v49, %v2046_v51 }
 0x192   :  { %918 = vperm.xlu0 %2333, %v3172_v18  }
 0x193   :  { %v2049_v21 = vpop.f32.mrb[6].mxu0  ;;  %v3202_v39 = vadd.f32 %v2048_v50, %v3169_v45 }
 0x194   :  { %v2050_v31 = vpop.f32.mrb[7].mxu0 }
 0x195   :  { %2335 = vset.pattern.permute.xlu1 %v4141_v48  ;;  %v2051_v37 = vadd.f32 %v2050_v31, %v2049_v21  ;;  %4206 = vst [vmem:[#allocation57_spill] sm:$0xff] %v3202_v39  ;;  %v4208_v21 = vmov 65  }
 0x196   :  { %922 = vperm.xlu1 %2335, %v3193_v33   ;;  %2334 = vset.pattern.permute.xlu0 %v4205_v14 }
 0x197   :  { %684 = vperm.xlu0 %2334, %v3193_v33   ;;  %v2052_v52 = vpop.f32.mrb[8].mxu0  ;;  %v3210_v51 = vadd.f32 %v2051_v37, %v3169_v45 }
 0x198   :  { %v2053_v44 = vpop.f32.mrb[9].mxu0 }
 0x199   :  { %v2054_v12 = vadd.f32 %v2053_v44, %v2052_v52  ;;  %4207 = vst [vmem:[#allocation58_spill] sm:$0xff] %v3210_v51 }
 0x19a   :  { %2336 = vset.pattern.permute.xlu1 %v4205_v14 }
 0x19b   :  { %689 = vperm.xlu1 %2336, %v3202_v39   ;;  %2338 = vset.pattern.permute.xlu0 %v4141_v48  ;;  %v2055_v49 = vpop.f32.mrb[10].mxu0  ;;  %v3217_v48 = vadd.f32 %v2054_v12, %v3169_v45 }
 0x19c   :  { %926 = vperm.xlu0 %2338, %v3202_v39   ;;  %v2056_v31 = vpop.f32.mrb[11].mxu0 }
 0x19d   :  { %v2057_v50 = vadd.f32 %v2056_v31, %v2055_v49  ;;  %4209 = vst [vmem:[#allocation59_spill] sm:$0xff] %v3217_v48 }
 0x19f   :  { %2337 = vset.pattern.permute.xlu1 %v4208_v21  ;;  %v2058_v33 = vpop.f32.mrb[12].mxu0  ;;  %v3223_v31 = vadd.f32 %v2057_v50, %v3169_v45 }
 0x1a0   :  { %798 = vperm.xlu1 %2337, %v3202_v39   ;;  %2339 = vset.pattern.permute.xlu0 %v4205_v14  ;;  %v2059_v44 = vpop.f32.mrb[13].mxu0 }
 0x1a1   :  { %694 = vperm.xlu0 %2339, %v3210_v51   ;;  %v2060_v52 = vadd.f32 %v2059_v44, %v2058_v33  ;;  %4211 = vst [vmem:[#allocation60_spill] sm:$0xff] %v3223_v31 }
 0x1a3   :  { %v2061_v18 = vpop.f32.mrb[14].mxu0  ;;  %v3230_v44 = vadd.f32 %v2060_v52, %v3169_v45 }
 0x1a4   :  { %802 = vperm.xlu1 %2337, %v3210_v51   ;;  %v2062_v37 = vpop.f32.mrb[15].mxu0 }
 0x1a5   :  { %2343 = vset.pattern.permute.xlu0 %v4210_v25  ;;  %v2063_v49 = vadd.f32 %v2062_v37, %v2061_v18  ;;  %4212 = vst [vmem:[#allocation61_spill] sm:$0xff] %v3230_v44 }
 0x1a6   :  { %934 = vperm.xlu0 %2343, %v3217_v48  }
 0x1a7   :  { %v2064_v39 = vpop.f32.mrb[16].mxu0 }
 0x1a8   :  { %2340 = vset.pattern.permute.xlu1 %v4210_v25  ;;  %v2065_v27 = vpop.f32.mrb[17].mxu0 }
 0x1a9   :  { %930 = vperm.xlu1 %2340, %v3210_v51   ;;  %v2066_v12 = vadd.f32 %v2065_v27, %v2064_v39  ;;  %v3237_v39 = vadd.f32 %v2063_v49, %v3169_v45 }
 0x1aa   :  { %2344 = vset.pattern.permute.xlu0 %v4205_v14 }
 0x1ab   :  { %704 = vperm.xlu0 %2344, %v3223_v31   ;;  %v2067_v33 = vpop.f32.mrb[18].mxu0  ;;  %4213 = vst [vmem:[#allocation62_spill] sm:$0xff] %v3237_v39  ;;  %v3244_v6 = vadd.f32 %v2066_v12, %v3169_v45 }
 0x1ac   :  { %v2068_v18 = vpop.f32.mrb[19].mxu0 }
 0x1ad   :  { %2341 = vset.pattern.permute.xlu1 %v4205_v14  ;;  %v2069_v50 = vadd.f32 %v2068_v18, %v2067_v33  ;;  %4214 = vst [vmem:[#allocation63_spill] sm:$0xff] %v3244_v6 }
 0x1ae   :  { %699 = vperm.xlu1 %2341, %v3217_v48  }
 0x1af   :  { %2348 = vset.pattern.permute.xlu0 %v4210_v25  ;;  %v2070_v37 = vpop.f32.mrb[20].mxu0 }
 0x1b0   :  { %942 = vperm.xlu0 %2348, %v3230_v44   ;;  %v2071_v27 = vpop.f32.mrb[21].mxu0 }
 0x1b1   :  { %v2072_v51 = vadd.f32 %v2071_v27, %v2070_v37  ;;  %v3250_v27 = vadd.f32 %v2069_v50, %v3169_v45 }
 0x1b2   :  { %2342 = vset.pattern.permute.xlu1 %v4208_v21 }
 0x1b3   :  { %806 = vperm.xlu1 %2342, %v3217_v48   ;;  %v2073_v52 = vpop.f32.mrb[22].mxu0  ;;  %4215 = vst [vmem:[#allocation64_spill] sm:$0xff] %v3250_v27  ;;  %v3263_v50 = vadd.f32 %v2072_v51, %v3169_v45 }
 0x1b4   :  { %2349 = vset.pattern.permute.xlu0 %v4205_v14  ;;  %v2074_v33 = vpop.f32.mrb[23].mxu0 }
 0x1b5   :  { %714 = vperm.xlu0 %2349, %v3237_v39   ;;  %v2075_v18 = vadd.f32 %v2074_v33, %v2073_v52  ;;  %4218 = vst [vmem:[#allocation67_spill] sm:$0xff] %v3263_v50 }
 0x1b7   :  { %810 = vperm.xlu1 %2342, %v3223_v31   ;;  %v2076_v4 = vpop.f32.mrb[24].mxu0 }
 0x1b8   :  { %v2077_v49 = vpop.f32.mrb[25].mxu0 }
 0x1b9   :  { %2353 = vset.pattern.permute.xlu0 %v4210_v25  ;;  %v2078_v37 = vadd.f32 %v2077_v49, %v2076_v4 }
 0x1ba   :  { %950 = vperm.xlu0 %2353, %v3244_v6  }
 0x1bb   :  { %2345 = vset.pattern.permute.xlu1 %v4210_v25  ;;  %v3254_v48 = vadd.f32 %v2078_v37, %v3169_v45  ;;  %v2079_v52 = vpop.f32.mrb[26].mxu0 }
 0x1bc   :  { %938 = vperm.xlu1 %2345, %v3223_v31   ;;  %v2080_v12 = vpop.f32.mrb[27].mxu0  ;;  %v3273_v31 = vadd.f32 %v2075_v18, %v3169_v45 }
 0x1bd   :  { %4216 = vst [vmem:[#allocation65_spill] sm:$0xff] %v3254_v48  ;;  %v2081_v33 = vadd.f32 %v2080_v12, %v2079_v52 }
 0x1be   :  { %2354 = vset.pattern.permute.xlu0 %v4205_v14  ;;  %4220 = vst [vmem:[#allocation69_spill] sm:$0xff] %v3273_v31 }
 0x1bf   :  { %724 = vperm.xlu0 %2354, %v3250_v27   ;;  %v3260_v4 = vadd.f32 %v2081_v33, %v3169_v45  ;;  %v2082_v49 = vpop.f32.mrb[28].mxu0 }
 0x1c0   :  { %2346 = vset.pattern.permute.xlu1 %v4205_v14  ;;  %v2083_v37 = vpop.f32.mrb[29].mxu0 }
 0x1c1   :  { %4217 = vst [vmem:[#allocation66_spill] sm:$0xff] %v3260_v4  ;;  %709 = vperm.xlu1 %2346, %v3230_v44   ;;  %v2084_v40 = vadd.f32 %v2083_v37, %v2082_v49  ;;  %v379_v37 = vld [vmem:[#allocation13] sm:$0xf] }
 0x1c3   :  { %2358 = vset.pattern.permute.xlu0 %v4210_v25  ;;  %v3269_v52 = vadd.f32 %v2084_v40, %v3169_v45  ;;  %v2085_v12 = vpop.f32.mrb[30].mxu0  ;;  %v4148_v40 = vmov 0.0  }
 0x1c4   :  { %958 = vperm.xlu0 %2358, %v3263_v50   ;;  %v2086_v33 = vpop.f32.mrb[31].mxu0  ;;  %1158 = vmatprep.mubr.f32.mxu1 %v4148_v40 }
 0x1c5   :  { %4219 = vst [vmem:[#allocation68_spill] sm:$0xff] %v3269_v52  ;;  %2347 = vset.pattern.permute.xlu1 %v4208_v21  ;;  %v2087_v51 = vadd.f32 %v2086_v33, %v2085_v12  ;;  %v3319_v12 = vpop.permute.xlu0 %560 }
 0x1c6   :  { %814 = vperm.xlu1 %2347, %v3230_v44   ;;  %4223 = vst [vmem:[#allocation71_spill] sm:$0xff] %v3319_v12 }
 0x1c7   :  { %v3278_v63 = vadd.f32 %v2087_v51, %v3169_v45 }
 0x1c8   :  { %2359 = vset.pattern.permute.xlu0 %v4205_v14 }
 0x1c9   :  { %734 = vperm.xlu0 %2359, %v3273_v31  }
 0x1ca   :  { %818 = vperm.xlu1 %2347, %v3237_v39  }
 0x1cd   :  { %2363 = vset.pattern.permute.xlu0 %v4210_v25 }
 0x1ce   :  { %2350 = vset.pattern.permute.xlu1 %v4210_v25  ;;  %966 = vperm.xlu0 %2363, %v3254_v48  }
 0x1cf   :  { %946 = vperm.xlu1 %2350, %v3237_v39  }
 0x1d2   :  { %2364 = vset.pattern.permute.xlu0 %v4205_v14 }
 0x1d3   :  { %2351 = vset.pattern.permute.xlu1 %v4205_v14  ;;  %744 = vperm.xlu0 %2364, %v3260_v4  }
 0x1d4   :  { %719 = vperm.xlu1 %2351, %v3244_v6  }
 0x1d7   :  { %2368 = vset.pattern.permute.xlu0 %v4210_v25 }
 0x1d8   :  { %2352 = vset.pattern.permute.xlu1 %v4208_v21  ;;  %974 = vperm.xlu0 %2368, %v3269_v52  }
 0x1d9   :  { %822 = vperm.xlu1 %2352, %v3244_v6  }
 0x1dc   :  { %2369 = vset.pattern.permute.xlu0 %v4205_v14 }
 0x1dd   :  { %826 = vperm.xlu1 %2352, %v3250_v27   ;;  %754 = vperm.xlu0 %2369, %v3278_v63  }
 0x1e1   :  { %2355 = vset.pattern.permute.xlu1 %v4210_v25  ;;  %592 = vrot.lane.b32.xlu0 %v2960_v54, %s2679_s10  ;;  %v4221_v54 = vlaneseq }
 0x1e2   :  { %954 = vperm.xlu1 %2355, %v3250_v27   ;;  %2371 = vset.pattern.permute.xlu0 %v4210_v25 }
 0x1e3   :  { %v481_v45 = vshrl.u32 %v4221_v54, 7 }
 0x1e5   :  { %v3317_v18 = vsub.s32 0, %v481_v45  ;;  %v486_v49 = vsub.s32 2, %v481_v45  ;;  %v3321_v33 = vsub.s32 1, %v481_v45  ;;  %v633_v51 = vsub.s32 3, %v481_v45 }
 0x1e6   :  { %2356 = vset.pattern.permute.xlu1 %v4205_v14 }
 0x1e7   :  { %729 = vperm.xlu1 %2356, %v3263_v50   ;;  %4222 = vst [vmem:[#allocation70_spill] sm:$0xff] %v3317_v18  ;;  %4224 = vst [vmem:[#allocation72_spill] sm:$0xff] %v3321_v33  ;;  %v483_v40 = vrot.slane %v379_v37, %v3317_v18  ;;  %v630_v54 = vrot.slane %v379_v37, %v3321_v33 }
 0x1e9   :  { %v3330_v27 = vrot.slane %v483_v40, %v3317_v18  ;;  %v3346_v40 = vrot.slane %v630_v54, %v3321_v33 }
 0x1eb   :  { %2357 = vset.pattern.permute.xlu1 %v4208_v21 }
 0x1ec   :  { %830 = vperm.xlu1 %2357, %v3263_v50   ;;  %v3325_v50 = vpop.permute.xlu1 %558 }
 0x1ed   :  { %4225 = vst [vmem:[#allocation73_spill] sm:$0xff] %v3325_v50 }
 0x1f0   :  { %834 = vperm.xlu1 %2357, %v3273_v31  }
 0x1f4   :  { %2360 = vset.pattern.permute.xlu1 %v4210_v25 }
 0x1f5   :  { %962 = vperm.xlu1 %2360, %v3273_v31   ;;  %v487_v31 = vrot.slane %v379_v37, %v486_v49  ;;  %v447_v49 = vsel %vm446_vm0, %v2962_v57, %v2972_v62 }
 0x1f7   :  { %v3333_v6 = vrot.slane %v487_v31, %v3317_v18 }
 0x1f9   :  { %2361 = vset.pattern.permute.xlu1 %v4205_v14 }
 0x1fa   :  { %739 = vperm.xlu1 %2361, %v3254_v48  }
 0x1fe   :  { %2362 = vset.pattern.permute.xlu1 %v4208_v21 }
 0x1ff   :  { %838 = vperm.xlu1 %2362, %v3254_v48   ;;  %v634_v48 = vrot.slane %v379_v37, %v633_v51  ;;  %v463_v37 = vsel %vm446_vm0, %v2972_v62, %v2962_v57  ;;  %v499_v51 = vmul.f32 %v3333_v6, %v447_v49  ;;  %v596_v49 = vsel %vm594_vm1, %v2984_v2, %v2987_v5 }
 0x201   :  { %v3349_v31 = vrot.slane %v634_v48, %v3321_v33 }
 0x203   :  { %842 = vperm.xlu1 %2362, %v3260_v4   ;;  %v646_v50 = vmul.f32 %v3349_v31, %v2995_v10 }
 0x207   :  { %2365 = vset.pattern.permute.xlu1 %v4210_v25 }
 0x208   :  { %970 = vperm.xlu1 %2365, %v3260_v4   ;;  %v645_v4 = vmul.f32 %v3346_v40, %v2991_v9  ;;  %v612_v9 = vsel %vm594_vm1, %v2987_v5, %v2984_v2 }
 0x20c   :  { %2366 = vset.pattern.permute.xlu1 %v4205_v14  ;;  %v791_v45 = vpop.permute.xlu1 %790  ;;  %v680_v12 = vpop.permute.xlu0 %679  ;;  %v498_v14 = vmul.f32 %v3330_v27, %v463_v37 }
 0x20d   :  { %749 = vperm.xlu1 %2366, %v3269_v52   ;;  %v853_v62 = vmul.f32 %v791_v45, %v2850_v42  ;;  %v854_v54 = vmul.f32 %v791_v45, %v2858_v46  ;;  %v758_v33 = vmul.f32 %v680_v12, %v499_v51  ;;  %v500_v42 = vmul.f32 %v3330_v27, %v2980_v1 }
 0x20e   :  { %v757_v48 = vmul.f32 %v680_v12, %v498_v14  ;;  %v501_v46 = vmul.f32 %v3333_v6, %v2976_v0  ;;  %v647_v14 = vmul.f32 %v3346_v40, %v596_v49  ;;  %v648_v51 = vmul.f32 %v3349_v31, %v612_v9 }
 0x20f   :  { %v886_v37 = vadd.f32 %v854_v54, %v758_v33 }
 0x210   :  { %v795_v18 = vpop.permute.xlu1 %794  ;;  %v885_v45 = vadd.f32 %v853_v62, %v757_v48 }
 0x211   :  { %2367 = vset.pattern.permute.xlu1 %v4208_v21  ;;  %v919_v57 = vpop.permute.xlu0 %918  ;;  %v855_v2 = vmul.f32 %v795_v18, %v2852_v43  ;;  %v856_v5 = vmul.f32 %v795_v18, %v2860_v47  ;;  %v449_v43 = vsel %vm446_vm0, %v2997_v11, %v2999_v13  ;;  %v465_v47 = vsel %vm446_vm0, %v2999_v13, %v2997_v11 }
 0x212   :  { %846 = vperm.xlu1 %2367, %v3269_v52   ;;  %v981_v10 = vmul.f32 %v919_v57, %v645_v4  ;;  %v982_v21 = vmul.f32 %v919_v57, %v646_v50 }
 0x214   :  { %v1013_v1 = vadd.f32 %v981_v10, %v885_v45  ;;  %v1014_v57 = vadd.f32 %v982_v21, %v886_v37  ;;  %v598_v45 = vsel %vm594_vm1, %v3009_v17, %v3011_v20 }
 0x215   :  { %v923_v12 = vpop.permute.xlu1 %922 }
 0x216   :  { %850 = vperm.xlu1 %2367, %v3278_v63   ;;  %v685_v52 = vpop.permute.xlu0 %684  ;;  %v983_v39 = vmul.f32 %v923_v12, %v647_v14  ;;  %v984_v0 = vmul.f32 %v923_v12, %v648_v51  ;;  %v1045_v49 = vmax.f32 %v1013_v1, 0.0 }
 0x217   :  { %v759_v4 = vmul.f32 %v685_v52, %v500_v42  ;;  %v760_v50 = vmul.f32 %v685_v52, %v501_v46  ;;  %v1046_v52 = vmax.f32 %v1014_v57, 0.0 }
 0x219   :  { %v887_v44 = vadd.f32 %v855_v2, %v759_v4  ;;  %v888_v62 = vadd.f32 %v856_v5, %v760_v50  ;;  %v504_v5 = vmul.f32 %v3330_v27, %v3007_v16  ;;  %v505_v4 = vmul.f32 %v3333_v6, %v3003_v15 }
 0x21a   :  { %2370 = vset.pattern.permute.xlu1 %v4210_v25  ;;  %v690_v33 = vpop.permute.xlu1 %689 }
 0x21b   :  { %978 = vperm.xlu1 %2370, %v3278_v63   ;;  %v1016_v54 = vadd.f32 %v984_v0, %v888_v62  ;;  %v1015_v48 = vadd.f32 %v983_v39, %v887_v44  ;;  %v927_v25 = vpop.permute.xlu0 %926  ;;  %v502_v44 = vmul.f32 %v3330_v27, %v465_v47  ;;  %v503_v39 = vmul.f32 %v3333_v6, %v449_v43 }
 0x21c   :  { %v651_v0 = vmul.f32 %v3346_v40, %v598_v45 }
 0x21d   :  { %v1048_v18 = vmax.f32 %v1016_v54, 0.0  ;;  %v1047_v9 = vmax.f32 %v1015_v48, 0.0  ;;  %v761_v11 = vmul.f32 %v690_v33, %v502_v44  ;;  %v762_v13 = vmul.f32 %v690_v33, %v503_v39 }
 0x21f   :  { %v799_v10 = vpop.permute.xlu1 %798  ;;  %v2120_v21 = vpack.c.bf16 %v1048_v18, %v1046_v52  ;;  %v2122_v42 = vpack.c.bf16 %v1047_v9, %v1045_v49  ;;  %590 = vrot.lane.b32.xlu1 %v2958_v53, %s2679_s10  ;;  %v614_v53 = vsel %vm594_vm1, %v3011_v20, %v3009_v17 }
 0x220   :  { %v857_v46 = vmul.f32 %v799_v10, %v2874_v55  ;;  %v858_v12 = vmul.f32 %v799_v10, %v2882_v59  ;;  %v649_v55 = vmul.f32 %v3346_v40, %v3015_v22  ;;  %v650_v59 = vmul.f32 %v3349_v31, %v3019_v23  ;;  %v695_v2 = vpop.permute.xlu0 %694 }
 0x221   :  { %2121 = vmatprep.subr.bf16.mxu1 %v2120_v21  ;;  %v763_v57 = vmul.f32 %v695_v2, %v504_v5  ;;  %v764_v22 = vmul.f32 %v695_v2, %v505_v4  ;;  %v652_v23 = vmul.f32 %v3349_v31, %v614_v53  ;;  %v451_v21 = vsel %vm446_vm0, %v3021_v24, %v3023_v26  ;;  %v2436_v5 = vld [vmem:[#allocation5 + $0x50] sm:$0xff] }
 0x222   :  { %2123 = vmatpush1.bf16.msra.mxu1 %v2122_v42  ;;  %v889_v14 = vadd.f32 %v857_v46, %v761_v11  ;;  %v890_v51 = vadd.f32 %v858_v12, %v762_v13  ;;  %v985_v20 = vmul.f32 %v927_v25, %v649_v55  ;;  %v986_v1 = vmul.f32 %v927_v25, %v650_v59 }
 0x223   :  { %v803_v37 = vpop.permute.xlu1 %802  ;;  %v467_v42 = vsel %vm446_vm0, %v3023_v26, %v3021_v24  ;;  %v507_v12 = vmul.f32 %v3333_v6, %v451_v21  ;;  %v616_v24 = vsel %vm594_vm1, %v3035_v32, %v3033_v30  ;;  %v653_v55 = vmul.f32 %v3346_v40, %v3039_v34 }
 0x224   :  { %v859_v50 = vmul.f32 %v803_v37, %v2876_v56  ;;  %v860_v17 = vmul.f32 %v803_v37, %v2884_v60  ;;  %v1017_v62 = vadd.f32 %v985_v20, %v889_v14  ;;  %v1018_v33 = vadd.f32 %v986_v1, %v890_v51 }
 0x225   :  { %v935_v44 = vpop.permute.xlu0 %934  ;;  %v506_v46 = vmul.f32 %v3330_v27, %v467_v42  ;;  %v600_v37 = vsel %vm594_vm1, %v3033_v30, %v3035_v32  ;;  %v508_v51 = vmul.f32 %v3330_v27, %v3031_v29  ;;  %v509_v2 = vmul.f32 %v3333_v6, %v3027_v28 }
 0x226   :  { %v891_v48 = vadd.f32 %v859_v50, %v763_v57  ;;  %v892_v16 = vadd.f32 %v860_v17, %v764_v22  ;;  %v1050_v49 = vmax.f32 %v1018_v33, 0.0  ;;  %v1049_v9 = vmax.f32 %v1017_v62, 0.0 }
 0x227   :  { %v989_v32 = vmul.f32 %v935_v44, %v653_v55  ;;  %v655_v20 = vmul.f32 %v3346_v40, %v600_v37  ;;  %v4227_v55 = vld [vmem:[#allocation23_spill] sm:$0xff] }
 0x228   :  { %v931_v54 = vpop.permute.xlu1 %930 }
 0x229   :  { %v987_v43 = vmul.f32 %v931_v54, %v651_v0  ;;  %v988_v47 = vmul.f32 %v931_v54, %v652_v23 }
 0x22b   :  { %v1019_v15 = vadd.f32 %v987_v43, %v891_v48  ;;  %v1020_v52 = vadd.f32 %v988_v47, %v892_v16 }
 0x22d   :  { %v1051_v56 = vmax.f32 %v1019_v15, 0.0  ;;  %v1052_v18 = vmax.f32 %v1020_v52, 0.0  ;;  %v700_v60 = vpop.permute.xlu1 %699  ;;  %v453_v52 = vsel %vm446_vm0, %v3045_v36, %v3047_v38 }
 0x22e   :  { %v765_v45 = vmul.f32 %v700_v60, %v506_v46  ;;  %v766_v53 = vmul.f32 %v700_v60, %v507_v12  ;;  %v4226_v12 = vld [vmem:[#allocation24_spill] sm:$0xff] }
 0x22f   :  { %v2124_v25 = vpack.c.bf16 %v1052_v18, %v1050_v49  ;;  %v2126_v10 = vpack.c.bf16 %v1051_v56, %v1049_v9  ;;  %v469_v56 = vsel %vm446_vm0, %v3047_v38, %v3045_v36  ;;  %v511_v9 = vmul.f32 %v3333_v6, %v453_v52 }
 0x230   :  { %v510_v49 = vmul.f32 %v3330_v27, %v469_v56  ;;  %v512_v36 = vmul.f32 %v3330_v27, %v3055_v41  ;;  %v1338_v41 = vld [vmem:[#allocation14 + $0x10] sm:$0xff]  ;;  %v1349_v56 = vld [vmem:[#allocation14 + $0x68] sm:$0xff] }
 0x231   :  { %2125 = vmatprep.subr.bf16.mxu1 %v2124_v25  ;;  %v2437_v25 = vld [vmem:[#allocation5 + $0x60] sm:$0xff] }
 0x232   :  { %v807_v39 = vpop.permute.xlu1 %806  ;;  %2127 = vmatpush1.bf16.msra.mxu1 %v2126_v10 }
 0x233   :  { %v861_v11 = vmul.f32 %v807_v39, %v2898_v3  ;;  %v862_v13 = vmul.f32 %v807_v39, %v2903_v7  ;;  %v654_v3 = vmul.f32 %v3349_v31, %v3043_v35  ;;  %v705_v7 = vpop.permute.xlu0 %704  ;;  %v656_v35 = vmul.f32 %v3349_v31, %v616_v24  ;;  %v1337_v24 = vld [vmem:[#allocation14 + $0x8] sm:$0xff] }
 0x234   :  { %v767_v17 = vmul.f32 %v705_v7, %v508_v51  ;;  %v768_v34 = vmul.f32 %v705_v7, %v509_v2  ;;  %v657_v39 = vmul.f32 %v3346_v40, %v3059_v61  ;;  %v2439_v7 = vld [vmem:[#allocation5 + $0x78] sm:$0xff]  ;;  %v1343_v51 = vld [vmem:[#allocation14 + $0x38] sm:$0xff] }
 0x235   :  { %v893_v59 = vadd.f32 %v861_v11, %v765_v45  ;;  %v894_v14 = vadd.f32 %v862_v13, %v766_v53  ;;  %v990_v50 = vmul.f32 %v935_v44, %v654_v3  ;;  %v658_v11 = vmul.f32 %v3349_v31, %v4226_v12  ;;  %v2438_v53 = vld [vmem:[#allocation5 + $0x70] sm:$0xff]  ;;  %v4228_v2 = vld [vmem:[#allocation25_spill] sm:$0xff]  ;;  %v1355_v12 = vld [vmem:[#allocation14 + $0x98] sm:$0xff] }
 0x236   :  { %v811_v26 = vpop.permute.xlu1 %810  ;;  %v513_v3 = vmul.f32 %v3333_v6, %v4227_v55  ;;  %v4233_v55 = vld [vmem:[#allocation34_spill] sm:$0xff] }
 0x237   :  { %v863_v4 = vmul.f32 %v2436_v5, %v811_v26  ;;  %v864_v30 = vmul.f32 %v811_v26, %v2905_v8  ;;  %v1021_v1 = vadd.f32 %v989_v32, %v893_v59  ;;  %v1022_v57 = vadd.f32 %v990_v50, %v894_v14  ;;  %v943_v18 = vpop.permute.xlu0 %942  ;;  %v1339_v26 = vld [vmem:[#allocation14 + $0x18] sm:$0xff]  ;;  %v1341_v14 = vld [vmem:[#allocation14 + $0x28] sm:$0xff]  ;;  %v1340_v50 = vld [vmem:[#allocation14 + $0x20] sm:$0xff] }
 0x238   :  { %v3464_v59 = vpack.c.bf16 %v1339_v26, %v1337_v24  ;;  %v659_v5 = vmul.f32 %v3346_v40, %v4228_v2  ;;  %v4232_v26 = vld [vmem:[#allocation33_spill] sm:$0xff] }
 0x239   :  { %v895_v0 = vadd.f32 %v863_v4, %v767_v17  ;;  %v896_v29 = vadd.f32 %v864_v30, %v768_v34  ;;  %v1054_v16 = vmax.f32 %v1022_v57, 0.0  ;;  %v1053_v43 = vmax.f32 %v1021_v1, 0.0  ;;  %v1342_v17 = vld [vmem:[#allocation14 + $0x30] sm:$0xff]  ;;  %v4229_v34 = vld [vmem:[#allocation26_spill] sm:$0xff] }
 0x23a   :  { %v993_v4 = vmul.f32 %v943_v18, %v657_v39  ;;  %v994_v30 = vmul.f32 %v943_v18, %v658_v11  ;;  %2153 = vmatprep.subr.bf16.mxu0 %v3464_v59  ;;  %v3473_v57 = vpack.c.bf16 %v1343_v51, %v1341_v14  ;;  %v1351_v18 = vld [vmem:[#allocation14 + $0x78] sm:$0xff]  ;;  %v1350_v39 = vld [vmem:[#allocation14 + $0x70] sm:$0xff]  ;;  %v4230_v11 = vld [vmem:[#allocation28_spill] sm:$0xff] }
 0x23b   :  { %v939_v22 = vpop.permute.xlu1 %938  ;;  %v715_v38 = vpop.permute.xlu0 %714  ;;  %v1354_v14 = vld [vmem:[#allocation14 + $0x90] sm:$0xff] }
 0x23c   :  { %v991_v23 = vmul.f32 %v939_v22, %v655_v20  ;;  %v992_v62 = vmul.f32 %v939_v22, %v656_v35  ;;  %v771_v32 = vmul.f32 %v715_v38, %v512_v36  ;;  %v660_v20 = vmul.f32 %v3349_v31, %v4229_v34  ;;  %v1345_v22 = vld [vmem:[#allocation14 + $0x48] sm:$0xff] }
 0x23d   :  { %v772_v35 = vmul.f32 %v715_v38, %v513_v3  ;;  %v662_v3 = vmul.f32 %v3349_v31, %v4233_v55  ;;  %v1365_v55 = vld [vmem:[#allocation14 + $0xe8] sm:$0xff] }
 0x23e   :  { %v1023_v28 = vadd.f32 %v991_v23, %v895_v0  ;;  %v1024_v33 = vadd.f32 %v992_v62, %v896_v29  ;;  %v1347_v0 = vld [vmem:[#allocation14 + $0x58] sm:$0xff] }
 0x240   :  { %v1055_v54 = vmax.f32 %v1023_v28, 0.0  ;;  %v1056_v48 = vmax.f32 %v1024_v33, 0.0  ;;  %v710_v8 = vpop.permute.xlu1 %709 }
 0x241   :  { %v769_v42 = vmul.f32 %v710_v8, %v510_v49  ;;  %v770_v44 = vmul.f32 %v710_v8, %v511_v9  ;;  %v3476_v8 = vpack.c.bf16 %v1342_v17, %v1340_v50  ;;  %v1357_v50 = vld [vmem:[#allocation14 + $0xa8] sm:$0xff]  ;;  %v1359_v17 = vld [vmem:[#allocation14 + $0xb8] sm:$0xff] }
 0x242   :  { %v2128_v47 = vpack.c.bf16 %v1056_v48, %v1054_v16  ;;  %v2130_v15 = vpack.c.bf16 %v1055_v54, %v1053_v43  ;;  %v3479_v16 = vpack.c.bf16 %v1347_v0, %v1345_v22  ;;  %v1344_v43 = vld [vmem:[#allocation14 + $0x40] sm:$0xff] }
 0x243   :  { %v4234_v0 = vld [vmem:[#allocation51_spill] sm:$0xff] }
 0x244   :  { %2129 = vmatprep.subr.bf16.mxu1 %v2128_v47  ;;  %v1346_v47 = vld [vmem:[#allocation14 + $0x50] sm:$0xff] }
 0x245   :  { %v815_v60 = vpop.permute.xlu1 %814  ;;  %2131 = vmatpush1.bf16.msra.mxu1 %v2130_v15 }
 0x246   :  { %v865_v10 = vmul.f32 %v2437_v25, %v815_v60  ;;  %v866_v21 = vmul.f32 %v815_v60, %v2920_v19  ;;  %v1336_v19 = vld [vmem:[#allocation14] sm:$0xff] }
 0x247   :  { %v3471_v1 = vpack.c.bf16 %v1338_v41, %v1336_v19  ;;  %v661_v19 = vmul.f32 %v3346_v40, %v4232_v26  ;;  %v1352_v41 = vld [vmem:[#allocation14 + $0x80] sm:$0xff]  ;;  %v1362_v26 = vld [vmem:[#allocation14 + $0xd0] sm:$0xff] }
 0x248   :  { %v897_v13 = vadd.f32 %v865_v10, %v769_v42  ;;  %v898_v45 = vadd.f32 %v866_v21, %v770_v44  ;;  %v3482_v21 = vpack.c.bf16 %v1346_v47, %v1344_v43  ;;  %v3485_v42 = vpack.c.bf16 %v1351_v18, %v1349_v56  ;;  %v1348_v44 = vld [vmem:[#allocation14 + $0x60] sm:$0xff]  ;;  %v4236_v56 = vld [vmem:[#allocation30_spill] sm:$0xff] }
 0x249   :  { %v819_v46 = vpop.permute.xlu1 %818  ;;  %2155 = vmatpush1.bf16.msra.mxu0 %v3471_v1  ;;  %v3492_v24 = vpack.c.bf16 %v1350_v39, %v1348_v44  ;;  %v516_v18 = vmul.f32 %v3330_v27, %v4236_v56  ;;  %v4238_v39 = vld [vmem:[#allocation31_spill] sm:$0xff]  ;;  %v1370_v56 = vld [vmem:[#allocation14 + $0x110] sm:$0xff] }
 0x24a   :  { %v867_v37 = vmul.f32 %v2438_v53, %v819_v46  ;;  %v868_v61 = vmul.f32 %v2439_v7, %v819_v46  ;;  %v1025_v29 = vadd.f32 %v993_v4, %v897_v13  ;;  %v1026_v23 = vadd.f32 %v994_v30, %v898_v45  ;;  %2157 = vmatprep.subr.bf16.mxu0 %v3473_v57  ;;  %v1353_v46 = vld [vmem:[#allocation14 + $0x88] sm:$0xff]  ;;  %v4231_v45 = vld [vmem:[#allocation27_spill] sm:$0xff] }
 0x24b   :  { %v514_v13 = vmul.f32 %v3330_v27, %v4230_v11  ;;  %v515_v53 = vmul.f32 %v3333_v6, %v4231_v45  ;;  %v2441_v30 = vld [vmem:[#allocation5 + $0x88] sm:$0xff] }
 0x24c   :  { %v899_v62 = vadd.f32 %v867_v37, %v771_v32  ;;  %v900_v33 = vadd.f32 %v868_v61, %v772_v35  ;;  %v1058_v60 = vmax.f32 %v1026_v23, 0.0  ;;  %v1057_v10 = vmax.f32 %v1025_v29, 0.0  ;;  %v951_v37 = vpop.permute.xlu0 %950 }
 0x24d   :  { %2159 = vmatpush1.bf16.msra.mxu0 %v3476_v8  ;;  %v3499_v61 = vpack.c.bf16 %v1355_v12, %v1353_v46  ;;  %v997_v34 = vmul.f32 %v951_v37, %v661_v19  ;;  %v3504_v29 = vpack.c.bf16 %v1354_v14, %v1352_v41  ;;  %v4240_v12 = vld [vmem:[#allocation56_spill] sm:$0xff] }
 0x24e   :  { %v947_v28 = vpop.permute.xlu1 %946  ;;  %2161 = vmatprep.subr.bf16.mxu0 %v3479_v16 }
 0x24f   :  { %v995_v54 = vmul.f32 %v947_v28, %v659_v5  ;;  %v996_v48 = vmul.f32 %v947_v28, %v660_v20  ;;  %v2440_v5 = vld [vmem:[#allocation5 + $0x80] sm:$0xff]  ;;  %v998_v20 = vmul.f32 %v951_v37, %v662_v3  ;;  %v3508_v28 = vpack.c.bf16 %v1359_v17, %v1357_v50  ;;  %v1360_v37 = vld [vmem:[#allocation14 + $0xc0] sm:$0xff] }
 0x250   :  { %v1367_v3 = vld [vmem:[#allocation14 + $0xf8] sm:$0xff]  ;;  %v1364_v50 = vld [vmem:[#allocation14 + $0xe0] sm:$0xff]  ;;  %v1366_v17 = vld [vmem:[#allocation14 + $0xf0] sm:$0xff] }
 0x251   :  { %v1027_v15 = vadd.f32 %v995_v54, %v899_v62  ;;  %v1028_v52 = vadd.f32 %v996_v48, %v900_v33  ;;  %2163 = vmatpush1.bf16.msra.mxu0 %v3482_v21  ;;  %v4235_v62 = vmov 0.0   ;;  %v1356_v33 = vld [vmem:[#allocation14 + $0xa0] sm:$0xff]  ;;  %v1358_v54 = vld [vmem:[#allocation14 + $0xb0] sm:$0xff]  ;;  %v725_v48 = vpop.permute.xlu0 %724 }
 0x252   :  { %2165 = vmatprep.subr.bf16.mxu0 %v3485_v42  ;;  %v3521_v11 = vpack.c.bf16 %v1358_v54, %v1356_v33  ;;  %v1371_v33 = vld [vmem:[#allocation14 + $0x118] sm:$0xff] }
 0x253   :  { %v1059_v49 = vmax.f32 %v1027_v15, 0.0  ;;  %v1060_v9 = vmax.f32 %v1028_v52, 0.0  ;;  %v720_v25 = vpop.permute.xlu1 %719  ;;  %v1361_v15 = vld [vmem:[#allocation14 + $0xc8] sm:$0xff]  ;;  %v1363_v52 = vld [vmem:[#allocation14 + $0xd8] sm:$0xff] }
 0x254   :  { %v773_v51 = vmul.f32 %v720_v25, %v514_v13  ;;  %v774_v2 = vmul.f32 %v720_v25, %v515_v53  ;;  %v775_v13 = vmul.f32 %v725_v48, %v516_v18  ;;  %v3525_v53 = vpack.c.bf16 %v1363_v52, %v1361_v15  ;;  %v4242_v54 = vld [vmem:[#allocation58_spill] sm:$0xff]  ;;  %v4243_v18 = vld [vmem:[#allocation36_spill] sm:$0xff] }
 0x255   :  { %v2132_v36 = vpack.c.bf16 %v1060_v9, %v1058_v60  ;;  %v2134_v38 = vpack.c.bf16 %v1059_v49, %v1057_v10  ;;  %2167 = vmatpush1.bf16.msra.mxu0 %v3492_v24  ;;  %v4237_v60 = vld [vmem:[#allocation29_spill] sm:$0xff]  ;;  %v2442_v9 = vld [vmem:[#allocation5 + $0x90] sm:$0xff] }
 0x256   :  { %2169 = vmatprep.subr.bf16.mxu0 %v3499_v61  ;;  %v517_v49 = vmul.f32 %v3333_v6, %v4237_v60  ;;  %v2443_v10 = vld [vmem:[#allocation5 + $0x98] sm:$0xff] }
 0x257   :  { %2133 = vmatprep.subr.bf16.mxu1 %v2132_v36  ;;  %v663_v36 = vmul.f32 %v3346_v40, %v4238_v39  ;;  %v1373_v39 = vld [vmem:[#allocation14 + $0x128] sm:$0xff] }
 0x258   :  { %v823_v7 = vpop.permute.xlu1 %822  ;;  %2135 = vmatpush1.bf16.msra.mxu1 %v2134_v38  ;;  %v4239_v38 = vld [vmem:[#allocation32_spill] sm:$0xff]  ;;  %v776_v45 = vmul.f32 %v725_v48, %v517_v49  ;;  %v3539_v48 = vpack.c.bf16 %v1366_v17, %v1364_v50  ;;  %v4244_v49 = vld [vmem:[#allocation35_spill] sm:$0xff] }
 0x259   :  { %v869_v4 = vmul.f32 %v2440_v5, %v823_v7  ;;  %v870_v32 = vmul.f32 %v2441_v30, %v823_v7  ;;  %v664_v46 = vmul.f32 %v3349_v31, %v4239_v38  ;;  %2171 = vmatpush1.bf16.msra.mxu0 %v3504_v29  ;;  %v3530_v5 = vpack.c.bf16 %v1362_v26, %v1360_v37  ;;  %v4246_v38 = vld [vmem:[#allocation42_spill] sm:$0xff] }
 0x25a   :  { %2173 = vmatprep.subr.bf16.mxu0 %v3508_v28 }
 0x25b   :  { %v901_v35 = vadd.f32 %v869_v4, %v773_v51  ;;  %v902_v22 = vadd.f32 %v870_v32, %v774_v2  ;;  %1992 = vmatmul.mubr.msk.f32.vlgmr.msra.gmra.mrb[0].mxu1 %vm1077_vm2, %v4234_v0  ;;  %v4241_v2 = vld [vmem:[#allocation57_spill] sm:$0xff]  ;;  %v3534_v32 = vpack.c.bf16 %v1367_v3, %v1365_v55  ;;  %v2445_v3 = vld [vmem:[#allocation5 + $0xa8] sm:$0xff] }
 0x25c   :  { %v827_v23 = vpop.permute.xlu1 %826  ;;  %1164 = vmatprep.mubr.f32.mxu1 %v4235_v62 }
 0x25d   :  { %v1029_v43 = vadd.f32 %v997_v34, %v901_v35  ;;  %v1030_v47 = vadd.f32 %v998_v20, %v902_v22  ;;  %v871_v25 = vmul.f32 %v2442_v9, %v827_v23  ;;  %v872_v44 = vmul.f32 %v2443_v10, %v827_v23  ;;  %2175 = vmatpush1.bf16.msra.mxu0 %v3521_v11  ;;  %v1369_v23 = vld [vmem:[#allocation14 + $0x108] sm:$0xff] }
 0x25e   :  { %2177 = vmatprep.subr.bf16.mxu0 %v3525_v53  ;;  %v3545_v60 = vpack.c.bf16 %v1371_v33, %v1369_v23  ;;  %v519_v9 = vmul.f32 %v3333_v6, %v4244_v49  ;;  %v2446_v49 = vld [vmem:[#allocation5 + $0xb0] sm:$0xff] }
 0x25f   :  { %1993 = vmatmul.mubr.msk.f32.gmra.mrb[2].mxu1 %vm1077_vm2, %v4240_v12  ;;  %v903_v7 = vadd.f32 %v871_v25, %v775_v13  ;;  %v904_v41 = vadd.f32 %v872_v44, %v776_v45  ;;  %v1061_v34 = vmax.f32 %v1029_v43, 0.0  ;;  %v1062_v0 = vmax.f32 %v1030_v47, 0.0  ;;  %v1368_v43 = vld [vmem:[#allocation14 + $0x100] sm:$0xff]  ;;  %v4245_v25 = vld [vmem:[#allocation41_spill] sm:$0xff]  ;;  %v959_v44 = vpop.permute.xlu0 %958 }
 0x260   :  { %1170 = vmatprep.mubr.f32.mxu1 %v4235_v62  ;;  %v518_v47 = vmul.f32 %v3330_v27, %v4243_v18  ;;  %v665_v10 = vmul.f32 %v3346_v40, %v4245_v25  ;;  %v4247_v45 = vld [vmem:[#allocation59_spill] sm:$0xff]  ;;  %v3556_v37 = vpack.c.bf16 %v1370_v56, %v1368_v43  ;;  %v4249_v43 = vld [vmem:[#allocation38_spill] sm:$0xff]  ;;  %v4250_v18 = vld [vmem:[#allocation37_spill] sm:$0xff] }
 0x261   :  { %v955_v19 = vpop.permute.xlu1 %954  ;;  %2179 = vmatpush1.bf16.msra.mxu0 %v3530_v5  ;;  %v520_v56 = vmul.f32 %v3330_v27, %v4249_v43  ;;  %v2447_v25 = vld [vmem:[#allocation5 + $0xb8] sm:$0xff] }
 0x262   :  { %v999_v14 = vmul.f32 %v955_v19, %v663_v36  ;;  %v1000_v51 = vmul.f32 %v955_v19, %v664_v46  ;;  %2181 = vmatprep.subr.bf16.mxu0 %v3534_v32  ;;  %v1375_v36 = vld [vmem:[#allocation14 + $0x138] sm:$0xff]  ;;  %v666_v46 = vmul.f32 %v3349_v31, %v4246_v38  ;;  %v1386_v43 = vld [vmem:[#allocation14 + $0x190] sm:$0xff] }
 0x263   :  { %1994 = vmatmul.mubr.msk.f32.gmra.mrb[4].mxu1 %vm1077_vm2, %v4241_v2  ;;  %v2444_v19 = vld [vmem:[#allocation5 + $0xa0] sm:$0xff]  ;;  %v1377_v2 = vld [vmem:[#allocation14 + $0x148] sm:$0xff] }
 0x264   :  { %v1031_v4 = vadd.f32 %v999_v14, %v903_v7  ;;  %v1032_v30 = vadd.f32 %v1000_v51, %v904_v41  ;;  %1176 = vmatprep.mubr.f32.mxu1 %v4235_v62  ;;  %v1372_v41 = vld [vmem:[#allocation14 + $0x120] sm:$0xff]  ;;  %v1374_v14 = vld [vmem:[#allocation14 + $0x130] sm:$0xff]  ;;  %v3560_v51 = vpack.c.bf16 %v1375_v36, %v1373_v39  ;;  %v1002_v50 = vmul.f32 %v959_v44, %v666_v46  ;;  %v1383_v39 = vld [vmem:[#allocation14 + $0x178] sm:$0xff] }
 0x265   :  { %2183 = vmatpush1.bf16.msra.mxu0 %v3539_v48  ;;  %v4251_v36 = vld [vmem:[#allocation39_spill] sm:$0xff]  ;;  %v4252_v46 = vld [vmem:[#allocation40_spill] sm:$0xff] }
 0x266   :  { %v1063_v20 = vmax.f32 %v1031_v4, 0.0  ;;  %v1064_v35 = vmax.f32 %v1032_v30, 0.0  ;;  %v730_v22 = vpop.permute.xlu1 %729  ;;  %2185 = vmatprep.subr.bf16.mxu0 %v3545_v60  ;;  %v1379_v4 = vld [vmem:[#allocation14 + $0x158] sm:$0xff]  ;;  %v1001_v30 = vmul.f32 %v959_v44, %v665_v10  ;;  %v1381_v44 = vld [vmem:[#allocation14 + $0x168] sm:$0xff]  ;;  %v667_v38 = vmul.f32 %v3346_v40, %v4251_v36 }
 0x267   :  { %1995 = vmatmul.mubr.msk.f32.gmra.mrb[6].mxu1 %vm1077_vm2, %v4242_v54  ;;  %v777_v12 = vmul.f32 %v730_v22, %v518_v47  ;;  %v778_v26 = vmul.f32 %v730_v22, %v519_v9  ;;  %v3565_v22 = vpack.c.bf16 %v1374_v14, %v1372_v41  ;;  %v3568_v54 = vpack.c.bf16 %v1379_v4, %v1377_v2  ;;  %v1382_v41 = vld [vmem:[#allocation14 + $0x170] sm:$0xff] }
 0x268   :  { %v2138_v15 = vpack.c.bf16 %v1063_v20, %v1061_v34  ;;  %1182 = vmatprep.mubr.f32.mxu1 %v4235_v62  ;;  %v2136_v52 = vpack.c.bf16 %v1064_v35, %v1062_v0  ;;  %v4248_v35 = vld [vmem:[#allocation60_spill] sm:$0xff]  ;;  %v735_v0 = vpop.permute.xlu0 %734  ;;  %v521_v47 = vmul.f32 %v3333_v6, %v4250_v18 }
 0x269   :  { %2187 = vmatpush1.bf16.msra.mxu0 %v3556_v37 }
 0x26a   :  { %2137 = vmatprep.subr.bf16.mxu1 %v2136_v52  ;;  %v1378_v52 = vld [vmem:[#allocation14 + $0x150] sm:$0xff]  ;;  %2189 = vmatprep.subr.bf16.mxu0 %v3560_v51 }
 0x26b   :  { %v831_v13 = vpop.permute.xlu1 %830  ;;  %1996 = vmatmul.mubr.msk.f32.gmra.mrb[8].mxu1 %vm1077_vm2, %v4247_v45  ;;  %v780_v45 = vmul.f32 %v735_v0, %v521_v47 }
 0x26c   :  { %v873_v55 = vmul.f32 %v2444_v19, %v831_v13  ;;  %v874_v7 = vmul.f32 %v2445_v3, %v831_v13  ;;  %2139 = vmatpush1.bf16.msra.mxu1 %v2138_v15  ;;  %1188 = vmatprep.mubr.f32.mxu1 %v4235_v62  ;;  %v1376_v15 = vld [vmem:[#allocation14 + $0x140] sm:$0xff]  ;;  %v779_v13 = vmul.f32 %v735_v0, %v520_v56 }
 0x26d   :  { %2191 = vmatpush1.bf16.msra.mxu0 %v3565_v22  ;;  %v3582_v19 = vpack.c.bf16 %v1378_v52, %v1376_v15  ;;  %v3586_v3 = vpack.c.bf16 %v1383_v39, %v1381_v44  ;;  %v1384_v52 = vld [vmem:[#allocation14 + $0x180] sm:$0xff] }
 0x26e   :  { %v905_v17 = vadd.f32 %v873_v55, %v777_v12  ;;  %v906_v34 = vadd.f32 %v874_v7, %v778_v26  ;;  %v668_v12 = vmul.f32 %v3349_v31, %v4252_v46  ;;  %v4253_v26 = vld [vmem:[#allocation61_spill] sm:$0xff]  ;;  %2193 = vmatprep.subr.bf16.mxu0 %v3568_v54  ;;  %v1380_v7 = vld [vmem:[#allocation14 + $0x160] sm:$0xff]  ;;  %v3598_v36 = vpack.c.bf16 %v1386_v43, %v1384_v52 }
 0x26f   :  { %v835_v20 = vpop.permute.xlu1 %834  ;;  %1997 = vmatmul.mubr.msk.f32.gmra.mrb[10].mxu1 %vm1077_vm2, %v4248_v35  ;;  %v4254_v35 = vld [vmem:[#allocation62_spill] sm:$0xff]  ;;  %v3591_v0 = vpack.c.bf16 %v1382_v41, %v1380_v7  ;;  %v1390_v46 = vld [vmem:[#allocation14 + $0x1b0] sm:$0xff] }
 0x270   :  { %v1033_v23 = vadd.f32 %v1001_v30, %v905_v17  ;;  %v1034_v33 = vadd.f32 %v1002_v50, %v906_v34  ;;  %1194 = vmatprep.mubr.f32.mxu1 %v4235_v62  ;;  %v875_v9 = vmul.f32 %v2446_v49, %v835_v20  ;;  %v876_v10 = vmul.f32 %v2447_v25, %v835_v20  ;;  %v1385_v50 = vld [vmem:[#allocation14 + $0x188] sm:$0xff]  ;;  %v1387_v17 = vld [vmem:[#allocation14 + $0x198] sm:$0xff]  ;;  %v4257_v41 = vld [vmem:[#allocation49_spill] sm:$0xff] }
 0x271   :  { %2195 = vmatpush1.bf16.msra.mxu0 %v3582_v19  ;;  %v3595_v15 = vpack.c.bf16 %v1387_v17, %v1385_v50  ;;  %v1389_v25 = vld [vmem:[#allocation14 + $0x1a8] sm:$0xff]  ;;  %v1395_v7 = vld [vmem:[#allocation14 + $0x1d8] sm:$0xff] }
 0x272   :  { %v907_v14 = vadd.f32 %v875_v9, %v779_v13  ;;  %v908_v2 = vadd.f32 %v876_v10, %v780_v45  ;;  %2197 = vmatprep.subr.bf16.mxu0 %v3586_v3  ;;  %v1065_v56 = vmax.f32 %v1033_v23, 0.0  ;;  %v1066_v9 = vmax.f32 %v1034_v33, 0.0  ;;  %v1391_v10 = vld [vmem:[#allocation14 + $0x1b8] sm:$0xff]  ;;  %v4255_v13 = vld [vmem:[#allocation44_spill] sm:$0xff]  ;;  %v4256_v45 = vld [vmem:[#allocation43_spill] sm:$0xff] }
 0x273   :  { %1998 = vmatmul.mubr.msk.f32.gmra.mrb[12].mxu1 %vm1077_vm2, %v4253_v26  ;;  %v522_v23 = vmul.f32 %v3330_v27, %v4255_v13  ;;  %v523_v33 = vmul.f32 %v3333_v6, %v4256_v45  ;;  %v967_v26 = vpop.permute.xlu0 %966  ;;  %v2449_v52 = vld [vmem:[#allocation5 + $0xc8] sm:$0xff] }
 0x274   :  { %v963_v55 = vpop.permute.xlu1 %962  ;;  %1200 = vmatprep.mubr.f32.mxu1 %v4235_v62 }
 0x275   :  { %v1003_v4 = vmul.f32 %v963_v55, %v667_v38  ;;  %v1004_v30 = vmul.f32 %v963_v55, %v668_v12  ;;  %2199 = vmatpush1.bf16.msra.mxu0 %v3591_v0  ;;  %v1388_v38 = vld [vmem:[#allocation14 + $0x1a0] sm:$0xff]  ;;  %v3601_v12 = vpack.c.bf16 %v1391_v10, %v1389_v25  ;;  %v1393_v55 = vld [vmem:[#allocation14 + $0x1c8] sm:$0xff] }
 0x276   :  { %2201 = vmatprep.subr.bf16.mxu0 %v3595_v15  ;;  %v3611_v50 = vpack.c.bf16 %v1390_v46, %v1388_v38  ;;  %v1399_v38 = vld [vmem:[#allocation14 + $0x1f8] sm:$0xff] }
 0x277   :  { %v1035_v34 = vadd.f32 %v1003_v4, %v907_v14  ;;  %v1036_v20 = vadd.f32 %v1004_v30, %v908_v2  ;;  %1999 = vmatmul.mubr.msk.f32.gmra.mrb[14].mxu1 %vm1077_vm2, %v4254_v35  ;;  %v669_v14 = vmul.f32 %v3346_v40, %v4257_v41  ;;  %v4258_v2 = vld [vmem:[#allocation50_spill] sm:$0xff] }
 0x278   :  { %1287 = vmatprep.mubr.f32.mxu1 %v4235_v62  ;;  %v670_v4 = vmul.f32 %v3349_v31, %v4258_v2  ;;  %v2451_v2 = vld [vmem:[#allocation5 + $0xd8] sm:$0xff] }
 0x279   :  { %v1067_v18 = vmax.f32 %v1035_v34, 0.0  ;;  %v1068_v47 = vmax.f32 %v1036_v20, 0.0  ;;  %v740_v49 = vpop.permute.xlu1 %739  ;;  %v2448_v20 = vld [vmem:[#allocation5 + $0xc0] sm:$0xff]  ;;  %2203 = vmatpush1.bf16.msra.mxu0 %v3598_v36 }
 0x27a   :  { %v781_v17 = vmul.f32 %v740_v49, %v522_v23  ;;  %v782_v34 = vmul.f32 %v740_v49, %v523_v33  ;;  %2205 = vmatprep.subr.bf16.mxu0 %v3601_v12  ;;  %v1006_v25 = vmul.f32 %v967_v26, %v670_v4  ;;  %v4260_v49 = vld [vmem:[#allocation46_spill] sm:$0xff]  ;;  %v745_v23 = vpop.permute.xlu0 %744 }
 0x27b   :  { %v2142_v44 = vpack.c.bf16 %v1067_v18, %v1065_v56  ;;  %v2140_v39 = vpack.c.bf16 %v1068_v47, %v1066_v9  ;;  %v3615_v56 = vpack.c.bf16 %v1395_v7, %v1393_v55  ;;  %v1392_v18 = vld [vmem:[#allocation14 + $0x1c0] sm:$0xff]  ;;  %v1394_v47 = vld [vmem:[#allocation14 + $0x1d0] sm:$0xff]  ;;  %v1005_v9 = vmul.f32 %v967_v26, %v669_v14 }
 0x27c   :  { %v524_v13 = vmul.f32 %v3330_v27, %v4260_v49  ;;  %v3620_v41 = vpack.c.bf16 %v1394_v47, %v1392_v18  ;;  %v4262_v55 = vld [vmem:[#allocation45_spill] sm:$0xff]  ;;  %v2450_v14 = vld [vmem:[#allocation5 + $0xd0] sm:$0xff] }
 0x27d   :  { %2141 = vmatprep.subr.bf16.mxu1 %v2140_v39  ;;  %4259 = vst [vmem:[#allocation24_spill] sm:$0xff] %v3615_v56  ;;  %v1397_v39 = vld [vmem:[#allocation14 + $0x1e8] sm:$0xff]  ;;  %2207 = vmatpush1.bf16.msra.mxu0 %v3611_v50  ;;  %v525_v7 = vmul.f32 %v3333_v6, %v4262_v55 }
 0x27e   :  { %v839_v30 = vpop.permute.xlu1 %838  ;;  %2143 = vmatpush1.bf16.msra.mxu1 %v2142_v44  ;;  %4261 = vst [vmem:[#allocation23_spill] sm:$0xff] %v3620_v41  ;;  %2209 = vmatprep.subr.bf16.mxu0 %v3615_v56 }
 0x27f   :  { %v877_v35 = vmul.f32 %v2448_v20, %v839_v30  ;;  %v878_v43 = vmul.f32 %v2449_v52, %v839_v30  ;;  %v3625_v30 = vpack.c.bf16 %v1399_v38, %v1397_v39  ;;  %v4265_v20 = vld [vmem:[#allocation48_spill] sm:$0xff]  ;;  %v783_v52 = vmul.f32 %v745_v23, %v524_v13 }
 0x281   :  { %v909_v10 = vadd.f32 %v877_v35, %v781_v17  ;;  %v910_v44 = vadd.f32 %v878_v43, %v782_v34  ;;  %4263 = vst [vmem:[#allocation25_spill] sm:$0xff] %v3625_v30  ;;  %v4264_v17 = vld [vmem:[#allocation47_spill] sm:$0xff]  ;;  %v672_v35 = vmul.f32 %v3349_v31, %v4265_v20  ;;  %v784_v43 = vmul.f32 %v745_v23, %v525_v7 }
 0x282   :  { %v843_v46 = vpop.permute.xlu1 %842  ;;  %v671_v34 = vmul.f32 %v3346_v40, %v4264_v17  ;;  %2211 = vmatpush1.bf16.msra.mxu0 %v3620_v41 }
 0x283   :  { %v1037_v45 = vadd.f32 %v1005_v9, %v909_v10  ;;  %v1038_v33 = vadd.f32 %v1006_v25, %v910_v44  ;;  %v879_v26 = vmul.f32 %v2450_v14, %v843_v46  ;;  %v880_v4 = vmul.f32 %v2451_v2, %v843_v46  ;;  %2213 = vmatprep.subr.bf16.mxu0 %v3625_v30  ;;  %v975_v44 = vpop.permute.xlu0 %974 }
 0x285   :  { %v911_v47 = vadd.f32 %v879_v26, %v783_v52  ;;  %v912_v9 = vadd.f32 %v880_v4, %v784_v43  ;;  %v1069_v46 = vmax.f32 %v1037_v45, 0.0  ;;  %v1070_v2 = vmax.f32 %v1038_v33, 0.0  ;;  %v4267_v52 = vld [vmem:[#allocation55_spill] sm:$0xff]  ;;  %v4268_v43 = vld [vmem:[#allocation54_spill] sm:$0xff] }
 0x286   :  { %v528_v33 = vmul.f32 %v3330_v27, %v4267_v52 }
 0x287   :  { %v971_v18 = vpop.permute.xlu1 %970  ;;  %v755_v23 = vpop.permute.xlu0 %754 }
 0x288   :  { %v1007_v25 = vmul.f32 %v971_v18, %v671_v34  ;;  %v1008_v10 = vmul.f32 %v971_v18, %v672_v35  ;;  %v4266_v34 = vld [vmem:[#allocation71_spill] sm:$0xff]  ;;  %v529_v18 = vmul.f32 %v3333_v6, %v4268_v43  ;;  %v787_v52 = vmul.f32 %v755_v23, %v528_v33 }
 0x28a   :  { %v1039_v39 = vadd.f32 %v1007_v25, %v911_v47  ;;  %v1040_v38 = vadd.f32 %v1008_v10, %v912_v9  ;;  %v2452_v25 = vld [vmem:[#allocation5 + $0xf0] sm:$0xff]  ;;  %v788_v43 = vmul.f32 %v755_v23, %v529_v18 }
 0x28b   :  { %v593_v4 = vpop.permute.xlu0 %592 }
 0x28c   :  { %v1071_v49 = vmax.f32 %v1039_v39, 0.0  ;;  %v1072_v55 = vmax.f32 %v1040_v38, 0.0  ;;  %v750_v14 = vpop.permute.xlu1 %749  ;;  %v610_v20 = vsel %vm594_vm1, %v4266_v34, %v593_v4  ;;  %v626_v45 = vsel %vm594_vm1, %v593_v4, %v4266_v34  ;;  %v2453_v39 = vld [vmem:[#allocation5 + $0xf8] sm:$0xff]  ;;  %v2455_v4 = vld [vmem:[#allocation5 + $0xe8] sm:$0xff] }
 0x28d   :  { %v675_v47 = vmul.f32 %v3346_v40, %v610_v20  ;;  %v676_v9 = vmul.f32 %v3349_v31, %v626_v45 }
 0x28e   :  { %v2146_v17 = vpack.c.bf16 %v1071_v49, %v1069_v46  ;;  %v2144_v13 = vpack.c.bf16 %v1072_v55, %v1070_v2  ;;  %v4269_v46 = vld [vmem:[#allocation53_spill] sm:$0xff]  ;;  %v4270_v55 = vld [vmem:[#allocation52_spill] sm:$0xff] }
 0x28f   :  { %v526_v49 = vmul.f32 %v3330_v27, %v4269_v46  ;;  %v527_v2 = vmul.f32 %v3333_v6, %v4270_v55 }
 0x290   :  { %2145 = vmatprep.subr.bf16.mxu1 %v2144_v13 }
 0x291   :  { %v847_v7 = vpop.permute.xlu1 %846  ;;  %2147 = vmatpush1.bf16.msra.mxu1 %v2146_v17  ;;  %v2454_v17 = vld [vmem:[#allocation5 + $0xe0] sm:$0xff]  ;;  %v785_v45 = vmul.f32 %v750_v14, %v526_v49  ;;  %v786_v56 = vmul.f32 %v750_v14, %v527_v2 }
 0x292   :  { %v881_v13 = vmul.f32 %v2454_v17, %v847_v7  ;;  %v882_v34 = vmul.f32 %v2455_v4, %v847_v7 }
 0x294   :  { %v913_v23 = vadd.f32 %v881_v13, %v785_v45  ;;  %v914_v33 = vadd.f32 %v882_v34, %v786_v56  ;;  %v4272_v56 = vld [vmem:[#allocation63_spill] sm:$0xff]  ;;  %v4277_v13 = vld [vmem:[#allocation66_spill] sm:$0xff]  ;;  %v4278_v34 = vld [vmem:[#allocation68_spill] sm:$0xff] }
 0x295   :  { %v851_v26 = vpop.permute.xlu1 %850 }
 0x296   :  { %v883_v10 = vmul.f32 %v2452_v25, %v851_v26  ;;  %v884_v38 = vmul.f32 %v2453_v39, %v851_v26  ;;  %v4271_v25 = vld [vmem:[#allocation73_spill] sm:$0xff] }
 0x298   :  { %v915_v6 = vadd.f32 %v883_v10, %v787_v52  ;;  %v916_v39 = vadd.f32 %v884_v38, %v788_v43  ;;  %v1396_v10 = vld [vmem:[#allocation14 + $0x1e0] sm:$0xff]  ;;  %v4276_v38 = vld [vmem:[#allocation65_spill] sm:$0xff] }
 0x299   :  { %v4281_v52 = vld [vmem:[#allocation25_spill] sm:$0xff] }
 0x29a   :  { %v979_v35 = vpop.permute.xlu1 %978 }
 0x29b   :  { %v1011_v30 = vmul.f32 %v979_v35, %v675_v47  ;;  %v1012_v20 = vmul.f32 %v979_v35, %v676_v9 }
 0x29d   :  { %v1043_v35 = vadd.f32 %v1011_v30, %v915_v6  ;;  %v1044_v18 = vadd.f32 %v1012_v20, %v916_v39  ;;  %v4273_v30 = vld [vmem:[#allocation64_spill] sm:$0xff] }
 0x29e   :  { %v591_v41 = vpop.permute.xlu1 %590 }
 0x29f   :  { %v609_v26 = vsel %vm594_vm1, %v4271_v25, %v591_v41  ;;  %v625_v27 = vsel %vm594_vm1, %v591_v41, %v4271_v25  ;;  %v1075_v55 = vmax.f32 %v1043_v35, 0.0  ;;  %v1076_v2 = vmax.f32 %v1044_v18, 0.0 }
 0x2a0   :  { %v673_v46 = vmul.f32 %v3346_v40, %v609_v26  ;;  %v674_v7 = vmul.f32 %v3349_v31, %v625_v27  ;;  %v1398_v40 = vld [vmem:[#allocation14 + $0x1f0] sm:$0xff] }
 0x2a1   :  { %v3658_v31 = vpack.c.bf16 %v1398_v40, %v1396_v10 }
 0x2a2   :  { %v1009_v47 = vmul.f32 %v975_v44, %v673_v46  ;;  %v1010_v14 = vmul.f32 %v975_v44, %v674_v7  ;;  %v4274_v44 = vld [vmem:[#allocation67_spill] sm:$0xff] }
 0x2a3   :  { %2215 = vmatpush1.bf16.msra.mxu0 %v3658_v31 }
 0x2a4   :  { %v1041_v9 = vadd.f32 %v1009_v47, %v913_v23  ;;  %v1042_v49 = vadd.f32 %v1010_v14, %v914_v33  ;;  %2217 = vmatprep.subr.bf16.mxu0 %v3464_v59 }
 0x2a6   :  { %v1073_v17 = vmax.f32 %v1041_v9, 0.0  ;;  %v1074_v4 = vmax.f32 %v1042_v49, 0.0 }
 0x2a8   :  { %v2148_v58 = vpack.c.bf16 %v1076_v2, %v1074_v4  ;;  %v2150_v41 = vpack.c.bf16 %v1075_v55, %v1073_v17 }
 0x2aa   :  { %2149 = vmatprep.subr.bf16.mxu1 %v2148_v58 }
 0x2ab   :  { %2151 = vmatpush1.bf16.msra.mxu1 %v2150_v41 }
 0x2ac   :  { %2280 = vmatprep.subr.bf16.mxu1 %v3464_v59  ;;  %v4275_v59 = vld [vmem:[#allocation69_spill] sm:$0xff] }
 0x2ae   :  { %2000 = vmatmul.mubr.msk.f32.vlgmr.msra.gmra.mrb[16].mxu1 %vm1077_vm2, %v4272_v56 }
 0x2af   :  { %1293 = vmatprep.mubr.f32.mxu1 %v4235_v62  ;;  %2296 = vmatpush1.bf16.msra.mxu1 %v3471_v1 }
 0x2b0   :  { %2281 = vmatprep.subr.bf16.mxu1 %v3473_v57 }
 0x2b2   :  { %2001 = vmatmul.mubr.msk.f32.gmra.mrb[18].mxu1 %vm1077_vm2, %v4273_v30 }
 0x2b3   :  { %1299 = vmatprep.mubr.f32.mxu1 %v4235_v62  ;;  %2297 = vmatpush1.bf16.msra.mxu1 %v3476_v8 }
 0x2b4   :  { %2282 = vmatprep.subr.bf16.mxu1 %v3479_v16 }
 0x2b6   :  { %2002 = vmatmul.mubr.msk.f32.gmra.mrb[20].mxu1 %vm1077_vm2, %v4274_v44 }
 0x2b7   :  { %1305 = vmatprep.mubr.f32.mxu1 %v4235_v62  ;;  %2298 = vmatpush1.bf16.msra.mxu1 %v3482_v21 }
 0x2b8   :  { %2283 = vmatprep.subr.bf16.mxu1 %v3485_v42 }
 0x2ba   :  { %2003 = vmatmul.mubr.msk.f32.gmra.mrb[22].mxu1 %vm1077_vm2, %v4275_v59 }
 0x2bb   :  { %1311 = vmatprep.mubr.f32.mxu1 %v4235_v62  ;;  %2299 = vmatpush1.bf16.msra.mxu1 %v3492_v24 }
 0x2bc   :  { %2284 = vmatprep.subr.bf16.mxu1 %v3499_v61 }
 0x2be   :  { %2004 = vmatmul.mubr.msk.f32.gmra.mrb[24].mxu1 %vm1077_vm2, %v4276_v38 }
 0x2bf   :  { %1317 = vmatprep.mubr.f32.mxu1 %v4235_v62  ;;  %2300 = vmatpush1.bf16.msra.mxu1 %v3504_v29 }
 0x2c0   :  { %2285 = vmatprep.subr.bf16.mxu1 %v3508_v28 }
 0x2c2   :  { %2005 = vmatmul.mubr.msk.f32.gmra.mrb[26].mxu1 %vm1077_vm2, %v4277_v13 }
 0x2c3   :  { %1323 = vmatprep.mubr.f32.mxu1 %v4235_v62  ;;  %2301 = vmatpush1.bf16.msra.mxu1 %v3521_v11 }
 0x2c4   :  { %2286 = vmatprep.subr.bf16.mxu1 %v3525_v53 }
 0x2c6   :  { %2006 = vmatmul.mubr.msk.f32.gmra.mrb[28].mxu1 %vm1077_vm2, %v4278_v34 }
 0x2c7   :  { %1329 = vmatprep.mubr.f32.mxu1 %v4235_v62  ;;  %2302 = vmatpush1.bf16.msra.mxu1 %v3530_v5  ;;  %v4280_v62 = vld [vmem:[#allocation23_spill] sm:$0xff] }
 0x2c8   :  { %2287 = vmatprep.subr.bf16.mxu1 %v3534_v32 }
 0x2ca   :  { %2007 = vmatmul.mubr.msk.f32.gmra.mrb[30].mxu1 %vm1077_vm2, %v3278_v63  ;;  %v4279_v63 = vld [vmem:[#allocation24_spill] sm:$0xff] }
 0x2cb   :  { %2303 = vmatpush1.bf16.msra.mxu1 %v3539_v48 }
 0x2cc   :  { %2288 = vmatprep.subr.bf16.mxu1 %v3545_v60 }
 0x2cf   :  { %2304 = vmatpush1.bf16.msra.mxu1 %v3556_v37 }
 0x2d0   :  { %2289 = vmatprep.subr.bf16.mxu1 %v3560_v51 }
 0x2d3   :  { %2305 = vmatpush1.bf16.msra.mxu1 %v3565_v22 }
 0x2d4   :  { %2290 = vmatprep.subr.bf16.mxu1 %v3568_v54 }
 0x2d7   :  { %2306 = vmatpush1.bf16.msra.mxu1 %v3582_v19 }
 0x2d8   :  { %2291 = vmatprep.subr.bf16.mxu1 %v3586_v3 }
 0x2db   :  { %2307 = vmatpush1.bf16.msra.mxu1 %v3591_v0 }
 0x2dc   :  { %2292 = vmatprep.subr.bf16.mxu1 %v3595_v15 }
 0x2df   :  { %2308 = vmatpush1.bf16.msra.mxu1 %v3598_v36 }
 0x2e0   :  { %2293 = vmatprep.subr.bf16.mxu1 %v3601_v12 }
 0x2e3   :  { %2309 = vmatpush1.bf16.msra.mxu1 %v3611_v50 }
 0x2e4   :  { %2294 = vmatprep.subr.bf16.mxu1 %v4279_v63 }
 0x2e7   :  { %2310 = vmatpush1.bf16.msra.mxu1 %v4280_v62 }
 0x2e8   :  { %2295 = vmatprep.subr.bf16.mxu1 %v4281_v52 }
 0x2eb   :  { %2311 = vmatpush1.bf16.msra.mxu1 %v3658_v31 }
 0x32e   :  { %v3716_v43 = vpop.f32.mrb[0].mxu1 }
 0x32f   :  { %v3718_v20 = vpop.f32.mrb[1].mxu1 }
 0x330   :  { %1464 = vmatprep.mubr.f32.mxu0 %v3718_v20 }
 0x331   :  { %1465 = vmatmul.mubr.f32.vlgmr.msra.gmra.mrb[32].mxu0 %v3716_v43 }
 0x332   :  { %v3722_v45 = vpop.f32.mrb[2].mxu1  ;;  %2219 = vmatpush1.bf16.msra.mxu0 %v3471_v1 }
 0x333   :  { %v3725_v25 = vpop.f32.mrb[3].mxu1  ;;  %2221 = vmatprep.subr.bf16.mxu0 %v3473_v57 }
 0x334   :  { %1470 = vmatprep.mubr.f32.mxu0 %v3725_v25 }
 0x335   :  { %1471 = vmatmul.mubr.f32.gmra.mrb[34].mxu0 %v3722_v45 }
 0x336   :  { %v3730_v26 = vpop.f32.mrb[4].mxu1  ;;  %2223 = vmatpush1.bf16.msra.mxu0 %v3476_v8 }
 0x337   :  { %v3733_v27 = vpop.f32.mrb[5].mxu1  ;;  %2225 = vmatprep.subr.bf16.mxu0 %v3479_v16 }
 0x338   :  { %1476 = vmatprep.mubr.f32.mxu0 %v3733_v27 }
 0x339   :  { %1477 = vmatmul.mubr.f32.gmra.mrb[36].mxu0 %v3730_v26 }
 0x33a   :  { %v3738_v1 = vpop.f32.mrb[6].mxu1  ;;  %2227 = vmatpush1.bf16.msra.mxu0 %v3482_v21 }
 0x33b   :  { %v3741_v57 = vpop.f32.mrb[7].mxu1  ;;  %2229 = vmatprep.subr.bf16.mxu0 %v3485_v42 }
 0x33c   :  { %1482 = vmatprep.mubr.f32.mxu0 %v3741_v57 }
 0x33d   :  { %1483 = vmatmul.mubr.f32.gmra.mrb[38].mxu0 %v3738_v1 }
 0x33e   :  { %v3746_v8 = vpop.f32.mrb[8].mxu1  ;;  %2231 = vmatpush1.bf16.msra.mxu0 %v3492_v24 }
 0x33f   :  { %v3749_v16 = vpop.f32.mrb[9].mxu1  ;;  %2233 = vmatprep.subr.bf16.mxu0 %v3499_v61 }
 0x340   :  { %1488 = vmatprep.mubr.f32.mxu0 %v3749_v16 }
 0x341   :  { %1489 = vmatmul.mubr.f32.gmra.mrb[40].mxu0 %v3746_v8 }
 0x342   :  { %v3754_v21 = vpop.f32.mrb[10].mxu1  ;;  %2235 = vmatpush1.bf16.msra.mxu0 %v3504_v29 }
 0x343   :  { %v3757_v42 = vpop.f32.mrb[11].mxu1  ;;  %2237 = vmatprep.subr.bf16.mxu0 %v3508_v28 }
 0x344   :  { %1494 = vmatprep.mubr.f32.mxu0 %v3757_v42 }
 0x345   :  { %1495 = vmatmul.mubr.f32.gmra.mrb[42].mxu0 %v3754_v21 }
 0x346   :  { %v3762_v24 = vpop.f32.mrb[12].mxu1  ;;  %2239 = vmatpush1.bf16.msra.mxu0 %v3521_v11 }
 0x347   :  { %v3765_v61 = vpop.f32.mrb[13].mxu1  ;;  %2241 = vmatprep.subr.bf16.mxu0 %v3525_v53 }
 0x348   :  { %1500 = vmatprep.mubr.f32.mxu0 %v3765_v61 }
 0x349   :  { %1501 = vmatmul.mubr.f32.gmra.mrb[44].mxu0 %v3762_v24 }
 0x34a   :  { %v3770_v29 = vpop.f32.mrb[14].mxu1  ;;  %2243 = vmatpush1.bf16.msra.mxu0 %v3530_v5 }
 0x34b   :  { %v3773_v28 = vpop.f32.mrb[15].mxu1  ;;  %2245 = vmatprep.subr.bf16.mxu0 %v3534_v32 }
 0x34c   :  { %1506 = vmatprep.mubr.f32.mxu0 %v3773_v28 }
 0x34d   :  { %1507 = vmatmul.mubr.f32.gmra.mrb[46].mxu0 %v3770_v29 }
 0x34e   :  { %2247 = vmatpush1.bf16.msra.mxu0 %v3539_v48 }
 0x34f   :  { %2249 = vmatprep.subr.bf16.mxu0 %v3545_v60 }
 0x352   :  { %2251 = vmatpush1.bf16.msra.mxu0 %v3556_v37 }
 0x353   :  { %2253 = vmatprep.subr.bf16.mxu0 %v3560_v51 }
 0x356   :  { %2255 = vmatpush1.bf16.msra.mxu0 %v3565_v22 }
 0x357   :  { %2257 = vmatprep.subr.bf16.mxu0 %v3568_v54 }
 0x35a   :  { %2259 = vmatpush1.bf16.msra.mxu0 %v3582_v19 }
 0x35b   :  { %2261 = vmatprep.subr.bf16.mxu0 %v3586_v3 }
 0x35e   :  { %2263 = vmatpush1.bf16.msra.mxu0 %v3591_v0 }
 0x35f   :  { %2265 = vmatprep.subr.bf16.mxu0 %v3595_v15 }
 0x362   :  { %2267 = vmatpush1.bf16.msra.mxu0 %v3598_v36 }
 0x363   :  { %2269 = vmatprep.subr.bf16.mxu0 %v3601_v12 }
 0x366   :  { %2271 = vmatpush1.bf16.msra.mxu0 %v3611_v50 }
 0x367   :  { %2273 = vmatprep.subr.bf16.mxu0 %v4279_v63 }
 0x36a   :  { %2275 = vmatpush1.bf16.msra.mxu0 %v4280_v62 }
 0x36b   :  { %2277 = vmatprep.subr.bf16.mxu0 %v4281_v52 }
 0x36e   :  { %2279 = vmatpush1.bf16.msra.mxu0 %v3658_v31 }
 0x381   :  { %v3795_v11 = vpop.f32.mrb[16].mxu1 }
 0x382   :  { %v3797_v53 = vpop.f32.mrb[17].mxu1 }
 0x383   :  { %1512 = vmatprep.mubr.f32.mxu0 %v3797_v53 }
 0x384   :  { %1513 = vmatmul.mubr.f32.gmra.mrb[48].mxu0 %v3795_v11 }
 0x385   :  { %v3801_v5 = vpop.f32.mrb[18].mxu1 }
 0x386   :  { %v3803_v32 = vpop.f32.mrb[19].mxu1 }
 0x387   :  { %1518 = vmatprep.mubr.f32.mxu0 %v3803_v32 }
 0x388   :  { %1519 = vmatmul.mubr.f32.gmra.mrb[50].mxu0 %v3801_v5 }
 0x389   :  { %v3807_v48 = vpop.f32.mrb[20].mxu1 }
 0x38a   :  { %v3809_v60 = vpop.f32.mrb[21].mxu1 }
 0x38b   :  { %1524 = vmatprep.mubr.f32.mxu0 %v3809_v60 }
 0x38c   :  { %1525 = vmatmul.mubr.f32.gmra.mrb[52].mxu0 %v3807_v48 }
 0x38d   :  { %v3813_v37 = vpop.f32.mrb[22].mxu1 }
 0x38e   :  { %v3815_v51 = vpop.f32.mrb[23].mxu1 }
 0x38f   :  { %1530 = vmatprep.mubr.f32.mxu0 %v3815_v51 }
 0x390   :  { %1531 = vmatmul.mubr.f32.gmra.mrb[54].mxu0 %v3813_v37 }
 0x391   :  { %v3819_v22 = vpop.f32.mrb[24].mxu1 }
 0x392   :  { %v3821_v54 = vpop.f32.mrb[25].mxu1 }
 0x393   :  { %1536 = vmatprep.mubr.f32.mxu0 %v3821_v54 }
 0x394   :  { %1537 = vmatmul.mubr.f32.gmra.mrb[56].mxu0 %v3819_v22 }
 0x395   :  { %v3825_v19 = vpop.f32.mrb[26].mxu1 }
 0x396   :  { %v3827_v3 = vpop.f32.mrb[27].mxu1 }
 0x397   :  { %1542 = vmatprep.mubr.f32.mxu0 %v3827_v3 }
 0x398   :  { %1543 = vmatmul.mubr.f32.gmra.mrb[58].mxu0 %v3825_v19 }
 0x399   :  { %v3831_v0 = vpop.f32.mrb[28].mxu1 }
 0x39a   :  { %v3833_v15 = vpop.f32.mrb[29].mxu1 }
 0x39b   :  { %1548 = vmatprep.mubr.f32.mxu0 %v3833_v15 }
 0x39c   :  { %1549 = vmatmul.mubr.f32.gmra.mrb[60].mxu0 %v3831_v0 }
 0x39d   :  { %v3837_v36 = vpop.f32.mrb[30].mxu1 }
 0x39e   :  { %v3839_v12 = vpop.f32.mrb[31].mxu1 }
 0x39f   :  { %1554 = vmatprep.mubr.f32.mxu0 %v3839_v12 }
 0x3a0   :  { %1555 = vmatmul.mubr.f32.gmra.mrb[62].mxu0 %v3837_v36 }
 0x404   :  { %v1466_v50 = vpop.f32.mrb[32].mxu0 }
 0x405   :  { %v3844_v6 = vsub.f32 %v3716_v43, %v1466_v50  ;;  %v1468_v39 = vpop.f32.mrb[33].mxu0 }
 0x406   :  { %v3847_v46 = vsub.f32 %v3718_v20, %v1468_v39 }
 0x407   :  { %v1593_v33 = vmul.f32 %v3844_v6, %v3844_v6 }
 0x408   :  { %v1594_v7 = vmul.f32 %v3847_v46, %v3847_v46  ;;  %v1472_v23 = vpop.f32.mrb[34].mxu0 }
 0x409   :  { %v3854_v35 = vsub.f32 %v3722_v45, %v1472_v23  ;;  %v1474_v18 = vpop.f32.mrb[35].mxu0 }
 0x40a   :  { %v3857_v47 = vsub.f32 %v3725_v25, %v1474_v18  ;;  %1689 = vmatprep.mubr.f32.mxu0 %v1594_v7 }
 0x40b   :  { %1690 = vmatmul.mubr.f32.vlgmr.msra.gmra.mrb[64].mxu0 %v1593_v33  ;;  %v1595_v49 = vmul.f32 %v3854_v35, %v3854_v35 }
 0x40c   :  { %v1596_v14 = vmul.f32 %v3857_v47, %v3857_v47  ;;  %v1478_v9 = vpop.f32.mrb[36].mxu0 }
 0x40d   :  { %v3864_v55 = vsub.f32 %v3730_v26, %v1478_v9  ;;  %v1480_v2 = vpop.f32.mrb[37].mxu0 }
 0x40e   :  { %v3867_v17 = vsub.f32 %v3733_v27, %v1480_v2  ;;  %1695 = vmatprep.mubr.f32.mxu0 %v1596_v14 }
 0x40f   :  { %1696 = vmatmul.mubr.f32.gmra.mrb[66].mxu0 %v1595_v49  ;;  %v1597_v41 = vmul.f32 %v3864_v55, %v3864_v55 }
 0x410   :  { %v1598_v4 = vmul.f32 %v3867_v17, %v3867_v17  ;;  %v1484_v58 = vpop.f32.mrb[38].mxu0 }
 0x411   :  { %v3874_v10 = vsub.f32 %v3738_v1, %v1484_v58  ;;  %v1486_v40 = vpop.f32.mrb[39].mxu0 }
 0x412   :  { %v3877_v31 = vsub.f32 %v3741_v57, %v1486_v40  ;;  %1701 = vmatprep.mubr.f32.mxu1 %v1598_v4 }
 0x413   :  { %1702 = vmatmul.mubr.f32.vlgmr.msra.gmra.mrb[32].mxu1 %v1597_v41  ;;  %v1599_v44 = vmul.f32 %v3874_v10, %v3874_v10 }
 0x414   :  { %v1600_v56 = vmul.f32 %v3877_v31, %v3877_v31  ;;  %v1490_v30 = vpop.f32.mrb[40].mxu0 }
 0x415   :  { %v3884_v59 = vsub.f32 %v3746_v8, %v1490_v30  ;;  %v1492_v38 = vpop.f32.mrb[41].mxu0 }
 0x416   :  { %v3887_v13 = vsub.f32 %v3749_v16, %v1492_v38  ;;  %1707 = vmatprep.mubr.f32.mxu1 %v1600_v56 }
 0x417   :  { %1708 = vmatmul.mubr.f32.gmra.mrb[34].mxu1 %v1599_v44  ;;  %v1601_v62 = vmul.f32 %v3884_v59, %v3884_v59 }
 0x418   :  { %v1602_v34 = vmul.f32 %v3887_v13, %v3887_v13  ;;  %v1496_v63 = vpop.f32.mrb[42].mxu0 }
 0x419   :  { %v3894_v52 = vsub.f32 %v3754_v21, %v1496_v63  ;;  %v1498_v43 = vpop.f32.mrb[43].mxu0 }
 0x41a   :  { %v3897_v20 = vsub.f32 %v3757_v42, %v1498_v43  ;;  %1713 = vmatprep.mubr.f32.mxu1 %v1602_v34 }
 0x41b   :  { %1714 = vmatmul.mubr.f32.gmra.mrb[36].mxu1 %v1601_v62  ;;  %v1603_v26 = vmul.f32 %v3894_v52, %v3894_v52 }
 0x41c   :  { %v1604_v45 = vmul.f32 %v3897_v20, %v3897_v20  ;;  %v1502_v25 = vpop.f32.mrb[44].mxu0 }
 0x41d   :  { %v3904_v27 = vsub.f32 %v3762_v24, %v1502_v25  ;;  %v1504_v1 = vpop.f32.mrb[45].mxu0 }
 0x41e   :  { %v3907_v57 = vsub.f32 %v3765_v61, %v1504_v1  ;;  %1719 = vmatprep.mubr.f32.mxu1 %v1604_v45 }
 0x41f   :  { %1720 = vmatmul.mubr.f32.gmra.mrb[38].mxu1 %v1603_v26  ;;  %v1605_v21 = vmul.f32 %v3904_v27, %v3904_v27 }
 0x420   :  { %v1606_v8 = vmul.f32 %v3907_v57, %v3907_v57  ;;  %v1508_v16 = vpop.f32.mrb[46].mxu0 }
 0x421   :  { %v3914_v42 = vsub.f32 %v3770_v29, %v1508_v16  ;;  %v1510_v50 = vpop.f32.mrb[47].mxu0 }
 0x422   :  { %v3917_v24 = vsub.f32 %v3773_v28, %v1510_v50  ;;  %1725 = vmatprep.mubr.f32.mxu1 %v1606_v8 }
 0x423   :  { %1726 = vmatmul.mubr.f32.gmra.mrb[40].mxu1 %v1605_v21  ;;  %v1607_v39 = vmul.f32 %v3914_v42, %v3914_v42 }
 0x424   :  { %v1608_v61 = vmul.f32 %v3917_v24, %v3917_v24 }
 0x426   :  { %1731 = vmatprep.mubr.f32.mxu1 %v1608_v61 }
 0x427   :  { %1732 = vmatmul.mubr.f32.gmra.mrb[42].mxu1 %v1607_v39 }
 0x457   :  { %v1514_v7 = vpop.f32.mrb[48].mxu0 }
 0x458   :  { %v3924_v23 = vsub.f32 %v3795_v11, %v1514_v7  ;;  %v1516_v29 = vpop.f32.mrb[49].mxu0 }
 0x459   :  { %v3927_v33 = vsub.f32 %v3797_v53, %v1516_v29 }
 0x45a   :  { %v1609_v14 = vmul.f32 %v3924_v23, %v3924_v23 }
 0x45b   :  { %v1610_v28 = vmul.f32 %v3927_v33, %v3927_v33  ;;  %v1520_v18 = vpop.f32.mrb[50].mxu0 }
 0x45c   :  { %v3934_v9 = vsub.f32 %v3801_v5, %v1520_v18  ;;  %v1522_v49 = vpop.f32.mrb[51].mxu0 }
 0x45d   :  { %v3937_v2 = vsub.f32 %v3803_v32, %v1522_v49  ;;  %1737 = vmatprep.mubr.f32.mxu1 %v1610_v28 }
 0x45e   :  { %1738 = vmatmul.mubr.f32.gmra.mrb[44].mxu1 %v1609_v14  ;;  %v1611_v4 = vmul.f32 %v3934_v9, %v3934_v9 }
 0x45f   :  { %v1612_v11 = vmul.f32 %v3937_v2, %v3937_v2  ;;  %v1526_v53 = vpop.f32.mrb[52].mxu0 }
 0x460   :  { %v3944_v58 = vsub.f32 %v3807_v48, %v1526_v53  ;;  %v1528_v41 = vpop.f32.mrb[53].mxu0 }
 0x461   :  { %v3947_v5 = vsub.f32 %v3809_v60, %v1528_v41  ;;  %1743 = vmatprep.mubr.f32.mxu1 %v1612_v11  ;;  %v1850_v41 = vld [vmem:[#allocation10] sm:$0x3] }
 0x462   :  { %1744 = vmatmul.mubr.f32.gmra.mrb[46].mxu1 %v1611_v4  ;;  %v1613_v56 = vmul.f32 %v3944_v58, %v3944_v58 }
 0x463   :  { %v1614_v32 = vmul.f32 %v3947_v5, %v3947_v5  ;;  %v1532_v40 = vpop.f32.mrb[54].mxu0 }
 0x464   :  { %v3954_v30 = vsub.f32 %v3813_v37, %v1532_v40  ;;  %v1534_v44 = vpop.f32.mrb[55].mxu0 }
 0x465   :  { %v3957_v48 = vsub.f32 %v3815_v51, %v1534_v44  ;;  %1749 = vmatprep.mubr.f32.mxu1 %v1614_v32  ;;  %v1894_v44 = vld [vmem:[#allocation11] sm:$0x3] }
 0x466   :  { %1750 = vmatmul.mubr.f32.gmra.mrb[48].mxu1 %v1613_v56  ;;  %v1615_v34 = vmul.f32 %v3954_v30, %v3954_v30 }
 0x467   :  { %v1616_v60 = vmul.f32 %v3957_v48, %v3957_v48  ;;  %v1538_v38 = vpop.f32.mrb[56].mxu0 }
 0x468   :  { %v3964_v63 = vsub.f32 %v3819_v22, %v1538_v38  ;;  %v1540_v62 = vpop.f32.mrb[57].mxu0 }
 0x469   :  { %v3967_v37 = vsub.f32 %v3821_v54, %v1540_v62  ;;  %1755 = vmatprep.mubr.f32.mxu1 %v1616_v60  ;;  %v4282_v60 = vld [vmem:[#allocation70_spill] sm:$0xff] }
 0x46a   :  { %1756 = vmatmul.mubr.f32.gmra.mrb[50].mxu1 %v1615_v34  ;;  %v1617_v45 = vmul.f32 %v3964_v63, %v3964_v63  ;;  %v4004_v38 = vrot.slane %v1850_v41, %v4282_v60 }
 0x46b   :  { %v1618_v51 = vmul.f32 %v3967_v37, %v3967_v37  ;;  %v1544_v43 = vpop.f32.mrb[58].mxu0 }
 0x46c   :  { %v3974_v25 = vsub.f32 %v3825_v19, %v1544_v43  ;;  %v1546_v26 = vpop.f32.mrb[59].mxu0 }
 0x46d   :  { %v3977_v22 = vsub.f32 %v3827_v3, %v1546_v26  ;;  %1761 = vmatprep.mubr.f32.mxu1 %v1618_v51  ;;  %v4283_v51 = vld [vmem:[#allocation72_spill] sm:$0xff] }
 0x46e   :  { %1762 = vmatmul.mubr.f32.gmra.mrb[52].mxu1 %v1617_v45  ;;  %v1619_v8 = vmul.f32 %v3974_v25, %v3974_v25  ;;  %v4007_v43 = vrot.slane %v1850_v41, %v4283_v51 }
 0x46f   :  { %v1620_v54 = vmul.f32 %v3977_v22, %v3977_v22  ;;  %v1550_v1 = vpop.f32.mrb[60].mxu0 }
 0x470   :  { %v3984_v16 = vsub.f32 %v3831_v0, %v1550_v1  ;;  %v1552_v21 = vpop.f32.mrb[61].mxu0 }
 0x471   :  { %v3987_v19 = vsub.f32 %v3833_v15, %v1552_v21  ;;  %1767 = vmatprep.mubr.f32.mxu1 %v1620_v54 }
 0x472   :  { %1768 = vmatmul.mubr.f32.gmra.mrb[54].mxu1 %v1619_v8  ;;  %v1621_v61 = vmul.f32 %v3984_v16, %v3984_v16  ;;  %v4011_v8 = vrot.slane %v1894_v44, %v4282_v60 }
 0x473   :  { %v1622_v3 = vmul.f32 %v3987_v19, %v3987_v19  ;;  %v1556_v50 = vpop.f32.mrb[62].mxu0 }
 0x474   :  { %v3994_v39 = vsub.f32 %v3837_v36, %v1556_v50  ;;  %v1558_v7 = vpop.f32.mrb[63].mxu0  ;;  %v4015_v50 = vrot.slane %v1894_v44, %v4283_v51 }
 0x475   :  { %v3997_v0 = vsub.f32 %v3839_v12, %v1558_v7  ;;  %1773 = vmatprep.mubr.f32.mxu1 %v1622_v3 }
 0x476   :  { %1774 = vmatmul.mubr.f32.gmra.mrb[56].mxu1 %v1621_v61  ;;  %v1623_v29 = vmul.f32 %v3994_v39, %v3994_v39 }
 0x477   :  { %v1624_v15 = vmul.f32 %v3997_v0, %v3997_v0 }
 0x479   :  { %1779 = vmatprep.mubr.f32.mxu1 %v1624_v15 }
 0x47a   :  { %1780 = vmatmul.mubr.f32.gmra.mrb[58].mxu1 %v1623_v29 }
 0x4de   :  { %v1691_v28 = vpop.f32.mrb[64].mxu0 }
 0x4df   :  { %v1692_v18 = vadd.f32 1e-05, %v1691_v28  ;;  %v1693_v14 = vpop.f32.mrb[65].mxu0 }
 0x4e0   :  { %v1694_v49 = vadd.f32 1e-05, %v1693_v14 }
 0x4e1   :  { %2372 = vrsqrt.f32 %v1692_v18 }
 0x4e2   :  { %2374 = vrsqrt.f32 %v1694_v49  ;;  %v1697_v36 = vpop.f32.mrb[66].mxu0 }
 0x4e3   :  { %v1698_v11 = vadd.f32 1e-05, %v1697_v36  ;;  %v1699_v12 = vpop.f32.mrb[67].mxu0 }
 0x4e4   :  { %v1700_v53 = vadd.f32 1e-05, %v1699_v12 }
 0x4e5   :  { %2376 = vrsqrt.f32 %v1698_v11 }
 0x4e6   :  { %2378 = vrsqrt.f32 %v1700_v53  ;;  %v1703_v4 = vpop.f32.mrb[32].mxu1 }
 0x4e7   :  { %v1704_v32 = vadd.f32 1e-05, %v1703_v4  ;;  %v1705_v40 = vpop.f32.mrb[33].mxu1 }
 0x4e8   :  { %v1706_v56 = vadd.f32 1e-05, %v1705_v40 }
 0x4e9   :  { %2380 = vrsqrt.f32 %v1704_v32 }
 0x4ea   :  { %2382 = vrsqrt.f32 %v1706_v56  ;;  %v1709_v34 = vpop.f32.mrb[34].mxu1 }
 0x4eb   :  { %v2373_v62 = vpop.eup %2372  ;;  %v1710_v45 = vadd.f32 1e-05, %v1709_v34  ;;  %v1711_v26 = vpop.f32.mrb[35].mxu1 }
 0x4ec   :  { %v2375_v54 = vpop.eup %2374  ;;  %v1818_v1 = vmul.f32 %v2373_v62, %v3844_v6  ;;  %v1712_v21 = vadd.f32 1e-05, %v1711_v26 }
 0x4ed   :  { %v1819_v3 = vmul.f32 %v2375_v54, %v3847_v46  ;;  %2384 = vrsqrt.f32 %v1710_v45 }
 0x4ee   :  { %v1862_v61 = vmul.f32 %v4004_v38, %v1818_v1  ;;  %2386 = vrsqrt.f32 %v1712_v21  ;;  %v1715_v7 = vpop.f32.mrb[36].mxu1 }
 0x4ef   :  { %v2377_v15 = vpop.eup %2376  ;;  %v1863_v29 = vmul.f32 %v4007_v43, %v1819_v3  ;;  %v1716_v28 = vadd.f32 1e-05, %v1715_v7  ;;  %v1717_v18 = vpop.f32.mrb[37].mxu1 }
 0x4f0   :  { %v2379_v6 = vpop.eup %2378  ;;  %v1906_v14 = vadd.f32 %v4011_v8, %v1862_v61  ;;  %v1820_v49 = vmul.f32 %v2377_v15, %v3854_v35  ;;  %v1718_v36 = vadd.f32 1e-05, %v1717_v18 }
 0x4f1   :  { %v1907_v46 = vadd.f32 %v4015_v50, %v1863_v29  ;;  %v1821_v11 = vmul.f32 %v2379_v6, %v3857_v47  ;;  %2388 = vrsqrt.f32 %v1716_v28 }
 0x4f2   :  { %1938 = vst [vmem:[#allocation16] sm:$0xff] %v1906_v14  ;;  %v1864_v12 = vmul.f32 %v4004_v38, %v1820_v49  ;;  %2390 = vrsqrt.f32 %v1718_v36  ;;  %v1721_v53 = vpop.f32.mrb[38].mxu1 }
 0x4f3   :  { %v2381_v4 = vpop.eup %2380  ;;  %1939 = vst [vmem:[#allocation16 + $0x8] sm:$0xff] %v1907_v46  ;;  %v1865_v41 = vmul.f32 %v4007_v43, %v1821_v11  ;;  %v1722_v32 = vadd.f32 1e-05, %v1721_v53  ;;  %v1723_v40 = vpop.f32.mrb[39].mxu1 }
 0x4f4   :  { %v2383_v56 = vpop.eup %2382  ;;  %v1908_v35 = vadd.f32 %v4011_v8, %v1864_v12  ;;  %v1822_v44 = vmul.f32 %v2381_v4, %v3864_v55  ;;  %v1724_v60 = vadd.f32 1e-05, %v1723_v40 }
 0x4f5   :  { %v1909_v47 = vadd.f32 %v4015_v50, %v1865_v41  ;;  %v1823_v34 = vmul.f32 %v2383_v56, %v3867_v17  ;;  %2392 = vrsqrt.f32 %v1722_v32 }
 0x4f6   :  { %1940 = vst [vmem:[#allocation16 + $0x10] sm:$0xff] %v1908_v35  ;;  %v1866_v62 = vmul.f32 %v4004_v38, %v1822_v44  ;;  %2394 = vrsqrt.f32 %v1724_v60  ;;  %v1727_v51 = vpop.f32.mrb[40].mxu1 }
 0x4f7   :  { %v2385_v45 = vpop.eup %2384  ;;  %1941 = vst [vmem:[#allocation16 + $0x18] sm:$0xff] %v1909_v47  ;;  %v1867_v26 = vmul.f32 %v4007_v43, %v1823_v34  ;;  %v1728_v54 = vadd.f32 1e-05, %v1727_v51  ;;  %v1729_v1 = vpop.f32.mrb[41].mxu1 }
 0x4f8   :  { %v2387_v21 = vpop.eup %2386  ;;  %v1910_v55 = vadd.f32 %v4011_v8, %v1866_v62  ;;  %v1824_v3 = vmul.f32 %v2385_v45, %v3874_v10  ;;  %v1730_v61 = vadd.f32 1e-05, %v1729_v1 }
 0x4f9   :  { %v1911_v17 = vadd.f32 %v4015_v50, %v1867_v26  ;;  %v1825_v7 = vmul.f32 %v2387_v21, %v3877_v31  ;;  %2396 = vrsqrt.f32 %v1728_v54 }
 0x4fa   :  { %1942 = vst [vmem:[#allocation16 + $0x20] sm:$0xff] %v1910_v55  ;;  %v1868_v15 = vmul.f32 %v4004_v38, %v1824_v3  ;;  %2398 = vrsqrt.f32 %v1730_v61  ;;  %v1733_v29 = vpop.f32.mrb[42].mxu1 }
 0x4fb   :  { %v2389_v28 = vpop.eup %2388  ;;  %1943 = vst [vmem:[#allocation16 + $0x28] sm:$0xff] %v1911_v17  ;;  %v1869_v18 = vmul.f32 %v4007_v43, %v1825_v7  ;;  %v1734_v6 = vadd.f32 1e-05, %v1733_v29  ;;  %v1735_v14 = vpop.f32.mrb[43].mxu1 }
 0x4fc   :  { %v2391_v49 = vpop.eup %2390  ;;  %v1912_v10 = vadd.f32 %v4011_v8, %v1868_v15  ;;  %v1826_v36 = vmul.f32 %v2389_v28, %v3884_v59  ;;  %v1736_v46 = vadd.f32 1e-05, %v1735_v14 }
 0x4fd   :  { %v1913_v31 = vadd.f32 %v4015_v50, %v1869_v18  ;;  %v1827_v11 = vmul.f32 %v2391_v49, %v3887_v13  ;;  %2400 = vrsqrt.f32 %v1734_v6 }
 0x4fe   :  { %1944 = vst [vmem:[#allocation16 + $0x30] sm:$0xff] %v1912_v10  ;;  %v1870_v12 = vmul.f32 %v4004_v38, %v1826_v36  ;;  %2402 = vrsqrt.f32 %v1736_v46 }
 0x4ff   :  { %v2393_v53 = vpop.eup %2392  ;;  %1945 = vst [vmem:[#allocation16 + $0x38] sm:$0xff] %v1913_v31  ;;  %v1871_v4 = vmul.f32 %v4007_v43, %v1827_v11 }
 0x500   :  { %v2395_v41 = vpop.eup %2394  ;;  %v1914_v32 = vadd.f32 %v4011_v8, %v1870_v12  ;;  %v1828_v40 = vmul.f32 %v2393_v53, %v3894_v52 }
 0x501   :  { %v1915_v59 = vadd.f32 %v4015_v50, %v1871_v4  ;;  %v1829_v56 = vmul.f32 %v2395_v41, %v3897_v20 }
 0x502   :  { %1946 = vst [vmem:[#allocation16 + $0x40] sm:$0xff] %v1914_v32  ;;  %v1872_v13 = vmul.f32 %v4004_v38, %v1828_v40 }
 0x503   :  { %v2397_v35 = vpop.eup %2396  ;;  %1947 = vst [vmem:[#allocation16 + $0x48] sm:$0xff] %v1915_v59  ;;  %v1873_v44 = vmul.f32 %v4007_v43, %v1829_v56 }
 0x504   :  { %v2399_v60 = vpop.eup %2398  ;;  %v1916_v47 = vadd.f32 %v4011_v8, %v1872_v13  ;;  %v1830_v34 = vmul.f32 %v2397_v35, %v3904_v27 }
 0x505   :  { %v1917_v62 = vadd.f32 %v4015_v50, %v1873_v44  ;;  %v1831_v52 = vmul.f32 %v2399_v60, %v3907_v57 }
 0x506   :  { %1948 = vst [vmem:[#allocation16 + $0x50] sm:$0xff] %v1916_v47  ;;  %v1874_v51 = vmul.f32 %v4004_v38, %v1830_v34 }
 0x507   :  { %v2401_v20 = vpop.eup %2400  ;;  %1949 = vst [vmem:[#allocation16 + $0x58] sm:$0xff] %v1917_v62  ;;  %v1875_v45 = vmul.f32 %v4007_v43, %v1831_v52 }
 0x508   :  { %v2403_v26 = vpop.eup %2402  ;;  %v1918_v54 = vadd.f32 %v4011_v8, %v1874_v51  ;;  %v1832_v1 = vmul.f32 %v2401_v20, %v3914_v42 }
 0x509   :  { %v1919_v21 = vadd.f32 %v4015_v50, %v1875_v45  ;;  %v1833_v27 = vmul.f32 %v2403_v26, %v3917_v24 }
 0x50a   :  { %1950 = vst [vmem:[#allocation16 + $0x60] sm:$0xff] %v1918_v54  ;;  %v1876_v55 = vmul.f32 %v4004_v38, %v1832_v1 }
 0x50b   :  { %1951 = vst [vmem:[#allocation16 + $0x68] sm:$0xff] %v1919_v21  ;;  %v1877_v57 = vmul.f32 %v4007_v43, %v1833_v27 }
 0x50c   :  { %v1920_v3 = vadd.f32 %v4011_v8, %v1876_v55 }
 0x50d   :  { %v1921_v61 = vadd.f32 %v4015_v50, %v1877_v57 }
 0x50e   :  { %1952 = vst [vmem:[#allocation16 + $0x70] sm:$0xff] %v1920_v3 }
 0x50f   :  { %1953 = vst [vmem:[#allocation16 + $0x78] sm:$0xff] %v1921_v61 }
 0x531   :  { %v1739_v17 = vpop.f32.mrb[44].mxu1 }
 0x532   :  { %v1740_v7 = vadd.f32 1e-05, %v1739_v17  ;;  %v1741_v15 = vpop.f32.mrb[45].mxu1 }
 0x533   :  { %v1742_v42 = vadd.f32 1e-05, %v1741_v15 }
 0x534   :  { %2404 = vrsqrt.f32 %v1740_v7 }
 0x535   :  { %2406 = vrsqrt.f32 %v1742_v42  ;;  %v1745_v29 = vpop.f32.mrb[46].mxu1 }
 0x536   :  { %v1746_v24 = vadd.f32 1e-05, %v1745_v29  ;;  %v1747_v28 = vpop.f32.mrb[47].mxu1 }
 0x537   :  { %v1748_v18 = vadd.f32 1e-05, %v1747_v28 }
 0x538   :  { %2408 = vrsqrt.f32 %v1746_v24 }
 0x539   :  { %2410 = vrsqrt.f32 %v1748_v18  ;;  %v1751_v6 = vpop.f32.mrb[48].mxu1 }
 0x53a   :  { %v1752_v14 = vadd.f32 1e-05, %v1751_v6  ;;  %v1753_v49 = vpop.f32.mrb[49].mxu1 }
 0x53b   :  { %v1754_v10 = vadd.f32 1e-05, %v1753_v49 }
 0x53c   :  { %2412 = vrsqrt.f32 %v1752_v14 }
 0x53d   :  { %2414 = vrsqrt.f32 %v1754_v10  ;;  %v1757_v36 = vpop.f32.mrb[50].mxu1 }
 0x53e   :  { %v2405_v46 = vpop.eup %2404  ;;  %v1758_v31 = vadd.f32 1e-05, %v1757_v36  ;;  %v1759_v11 = vpop.f32.mrb[51].mxu1 }
 0x53f   :  { %v2407_v12 = vpop.eup %2406  ;;  %v1834_v53 = vmul.f32 %v2405_v46, %v3924_v23  ;;  %v1760_v4 = vadd.f32 1e-05, %v1759_v11 }
 0x540   :  { %v1835_v41 = vmul.f32 %v2407_v12, %v3927_v33  ;;  %2416 = vrsqrt.f32 %v1758_v31 }
 0x541   :  { %v1878_v32 = vmul.f32 %v4004_v38, %v1834_v53  ;;  %2418 = vrsqrt.f32 %v1760_v4  ;;  %v1763_v40 = vpop.f32.mrb[52].mxu1 }
 0x542   :  { %v2409_v59 = vpop.eup %2408  ;;  %v1879_v56 = vmul.f32 %v4007_v43, %v1835_v41  ;;  %v1764_v13 = vadd.f32 1e-05, %v1763_v40  ;;  %v1765_v35 = vpop.f32.mrb[53].mxu1 }
 0x543   :  { %v2411_v44 = vpop.eup %2410  ;;  %v1922_v60 = vadd.f32 %v4011_v8, %v1878_v32  ;;  %v1836_v47 = vmul.f32 %v2409_v59, %v3934_v9  ;;  %v1766_v34 = vadd.f32 1e-05, %v1765_v35 }
 0x544   :  { %v1923_v23 = vadd.f32 %v4015_v50, %v1879_v56  ;;  %v1837_v33 = vmul.f32 %v2411_v44, %v3937_v2  ;;  %2420 = vrsqrt.f32 %v1764_v13 }
 0x545   :  { %1954 = vst [vmem:[#allocation16 + $0x80] sm:$0xff] %v1922_v60  ;;  %v1880_v62 = vmul.f32 %v4004_v38, %v1836_v47  ;;  %2422 = vrsqrt.f32 %v1766_v34  ;;  %v1769_v52 = vpop.f32.mrb[54].mxu1 }
 0x546   :  { %v2413_v51 = vpop.eup %2412  ;;  %1955 = vst [vmem:[#allocation16 + $0x88] sm:$0xff] %v1923_v23  ;;  %v1881_v20 = vmul.f32 %v4007_v43, %v1837_v33  ;;  %v1770_v45 = vadd.f32 1e-05, %v1769_v52  ;;  %v1771_v26 = vpop.f32.mrb[55].mxu1 }
 0x547   :  { %v2415_v54 = vpop.eup %2414  ;;  %v1924_v9 = vadd.f32 %v4011_v8, %v1880_v62  ;;  %v1838_v1 = vmul.f32 %v2413_v51, %v3944_v58  ;;  %v1772_v21 = vadd.f32 1e-05, %v1771_v26 }
 0x548   :  { %v1925_v2 = vadd.f32 %v4015_v50, %v1881_v20  ;;  %v1839_v27 = vmul.f32 %v2415_v54, %v3947_v5  ;;  %2424 = vrsqrt.f32 %v1770_v45 }
 0x549   :  { %1956 = vst [vmem:[#allocation16 + $0x90] sm:$0xff] %v1924_v9  ;;  %v1882_v55 = vmul.f32 %v4004_v38, %v1838_v1  ;;  %2426 = vrsqrt.f32 %v1772_v21  ;;  %v1775_v57 = vpop.f32.mrb[56].mxu1 }
 0x54a   :  { %v2417_v3 = vpop.eup %2416  ;;  %1957 = vst [vmem:[#allocation16 + $0x98] sm:$0xff] %v1925_v2  ;;  %v1883_v61 = vmul.f32 %v4007_v43, %v1839_v27  ;;  %v1776_v17 = vadd.f32 1e-05, %v1775_v57  ;;  %v1777_v7 = vpop.f32.mrb[57].mxu1 }
 0x54b   :  { %v2419_v15 = vpop.eup %2418  ;;  %v1926_v58 = vadd.f32 %v4011_v8, %v1882_v55  ;;  %v1840_v42 = vmul.f32 %v2417_v3, %v3954_v30  ;;  %v1778_v29 = vadd.f32 1e-05, %v1777_v7 }
 0x54c   :  { %v1927_v5 = vadd.f32 %v4015_v50, %v1883_v61  ;;  %v1841_v24 = vmul.f32 %v2419_v15, %v3957_v48  ;;  %2428 = vrsqrt.f32 %v1776_v17 }
 0x54d   :  { %1958 = vst [vmem:[#allocation16 + $0xa0] sm:$0xff] %v1926_v58  ;;  %v1884_v28 = vmul.f32 %v4004_v38, %v1840_v42  ;;  %2430 = vrsqrt.f32 %v1778_v29  ;;  %v1781_v18 = vpop.f32.mrb[58].mxu1 }
 0x54e   :  { %v2421_v6 = vpop.eup %2420  ;;  %1959 = vst [vmem:[#allocation16 + $0xa8] sm:$0xff] %v1927_v5  ;;  %v1885_v14 = vmul.f32 %v4007_v43, %v1841_v24  ;;  %v1782_v49 = vadd.f32 1e-05, %v1781_v18  ;;  %v1783_v10 = vpop.f32.mrb[59].mxu1 }
 0x54f   :  { %v2423_v36 = vpop.eup %2422  ;;  %v1928_v30 = vadd.f32 %v4011_v8, %v1884_v28  ;;  %v1842_v46 = vmul.f32 %v2421_v6, %v3964_v63  ;;  %v1784_v31 = vadd.f32 1e-05, %v1783_v10 }
 0x550   :  { %v1929_v48 = vadd.f32 %v4015_v50, %v1885_v14  ;;  %v1843_v11 = vmul.f32 %v2423_v36, %v3967_v37  ;;  %2432 = vrsqrt.f32 %v1782_v49 }
 0x551   :  { %1960 = vst [vmem:[#allocation16 + $0xb0] sm:$0xff] %v1928_v30  ;;  %v1886_v12 = vmul.f32 %v4004_v38, %v1842_v46  ;;  %2434 = vrsqrt.f32 %v1784_v31 }
 0x552   :  { %v2425_v53 = vpop.eup %2424  ;;  %1961 = vst [vmem:[#allocation16 + $0xb8] sm:$0xff] %v1929_v48  ;;  %v1887_v4 = vmul.f32 %v4007_v43, %v1843_v11 }
 0x553   :  { %v2427_v41 = vpop.eup %2426  ;;  %v1930_v32 = vadd.f32 %v4011_v8, %v1886_v12  ;;  %v1844_v40 = vmul.f32 %v2425_v53, %v3974_v25 }
 0x554   :  { %v1931_v63 = vadd.f32 %v4015_v50, %v1887_v4  ;;  %v1845_v59 = vmul.f32 %v2427_v41, %v3977_v22 }
 0x555   :  { %1962 = vst [vmem:[#allocation16 + $0xc0] sm:$0xff] %v1930_v32  ;;  %v1888_v37 = vmul.f32 %v4004_v38, %v1844_v40 }
 0x556   :  { %v2429_v56 = vpop.eup %2428  ;;  %1963 = vst [vmem:[#allocation16 + $0xc8] sm:$0xff] %v1931_v63  ;;  %v1889_v13 = vmul.f32 %v4007_v43, %v1845_v59 }
 0x557   :  { %v2431_v35 = vpop.eup %2430  ;;  %v1932_v44 = vadd.f32 %v4011_v8, %v1888_v37  ;;  %v1846_v60 = vmul.f32 %v2429_v56, %v3984_v16 }
 0x558   :  { %v1933_v47 = vadd.f32 %v4015_v50, %v1889_v13  ;;  %v1847_v25 = vmul.f32 %v2431_v35, %v3987_v19 }
 0x559   :  { %1964 = vst [vmem:[#allocation16 + $0xd0] sm:$0xff] %v1932_v44  ;;  %v1890_v34 = vmul.f32 %v4004_v38, %v1846_v60 }
 0x55a   :  { %v2433_v22 = vpop.eup %2432  ;;  %1965 = vst [vmem:[#allocation16 + $0xd8] sm:$0xff] %v1933_v47  ;;  %v1891_v23 = vmul.f32 %v4007_v43, %v1847_v25 }
 0x55b   :  { %v2435_v33 = vpop.eup %2434  ;;  %v1934_v62 = vadd.f32 %v4011_v8, %v1890_v34  ;;  %v1848_v52 = vmul.f32 %v2433_v22, %v3994_v39 }
 0x55c   :  { %v1935_v51 = vadd.f32 %v4015_v50, %v1891_v23  ;;  %v1849_v16 = vmul.f32 %v2435_v33, %v3997_v0 }
 0x55d   :  { %1966 = vst [vmem:[#allocation16 + $0xe0] sm:$0xff] %v1934_v62  ;;  %v1892_v20 = vmul.f32 %v4004_v38, %v1848_v52 }
 0x55e   :  { %1967 = vst [vmem:[#allocation16 + $0xe8] sm:$0xff] %v1935_v51  ;;  %v1893_v19 = vmul.f32 %v4007_v43, %v1849_v16 }
 0x55f   :  { %v1936_v45 = vadd.f32 %v4011_v8, %v1892_v20 }
 0x560   :  { %v1937_v26 = vadd.f32 %v4015_v50, %v1893_v19 }
 0x561   :  { %1968 = vst [vmem:[#allocation16 + $0xf0] sm:$0xff] %v1936_v45 }
 0x562   :  { %1969 = vst [vmem:[#allocation16 + $0xf8] sm:$0xff] %v1937_v26 }
 0x563   :  { %2643 = shalt.err (!%p2640_p12)
}
 0x564   :  { %s2644_s16 = scalar_lea.hbm %s4134_s8, 4096 }
 0x565   :  { %p2645_p13 = scmp.ne.s32.totalorder %s4134_s8, %s2644_s16  ;;  %p2648_p0 = scmp.lt.u32.totalorder %s2644_s16, %s4134_s8 }
 0x567   :  { %p2650_p1 = pnand %p2648_p0, %p2645_p13 }
 0x569   :  { %2653 = shalt.err (!%p2650_p1)
}
 0x56a   :  { %1981 = dma.vmem_to_hbm [thread:$0]  %s1976_s2, 4096, %s4134_s8, [#allocation4], %s2668_s17, %s2668_s17, %s2669_s18  }
 0x56b   :  { %2664 = dma.done.wait [#allocation4], 4096  }
 0x56c   :  { %2665 = vsyncadd [#allocation4], 4294963200 }
 0x56d   :  { %1985 = vsyncpa [#allocation3], 1 }
 0x56e   :  { %1986 = vsyncpa [#allocation6], 1 }
 0x56f   :  { %1987 = vsyncpa [#allocation9], 1 }
 0x570   :  { %1988 = vsyncpa [#allocation12], 1 }
 0x571   :  { %1989 = vsyncpa [#allocation15], 1 }
 0x572   :  { %1990 = vsyncpa [#allocation4], 1 }

</bundles_post_ra>
